<compile_context>
chip_gen: v5e
topology: v5e:2x2
jax: 0.10.0
libtpu: 0.0.40
codegen_flags: <defaults>
</compile_context>

<pallas_src>
import jax
import jax.numpy as jnp
import numpy as np
from jax.experimental import pallas as pl
from jax.experimental.pallas import tpu as pltpu


# ----------------------------------------------------------------------------
# Fused Pallas kernel
# ----------------------------------------------------------------------------
def _sigmoid(x):
    # One EUP op (tanh) instead of exp + reciprocal.
    return 0.5 * jnp.tanh(0.5 * x) + 0.5


def _make_fused_lstm_kernel(T, B, H, L):
    """Build the fused LSTM+Linear kernel for a fixed (T, B, H, L).

    Positional ref layout:
      inputs : x2d (T*B, I) time-major, then per layer [w_ih_t, w_hh_t, bias],
               then w_lin_t (H, O), b_lin (1, O)
      outputs: out (B, O)
      scratch: gx_scr (T*B, 4H) f32   -- hoisted input-projection gates
               seq_scr (T*B, H) f32   -- current layer's hidden sequence
    """

    def kernel(*refs):
        x_ref = refs[0]
        layer_refs = refs[1:1 + 3 * L]
        w_lin_ref = refs[1 + 3 * L]
        b_lin_ref = refs[2 + 3 * L]
        out_ref = refs[3 + 3 * L]
        gx_scr = refs[4 + 3 * L]
        seq_scr = refs[5 + 3 * L]

        h_last = None
        for layer in range(L):
            w_ih = layer_refs[3 * layer + 0][...]   # (I or H, 4H)
            w_hh = layer_refs[3 * layer + 1][...]   # (H, 4H)
            bias = layer_refs[3 * layer + 2][...]   # (1, 4H) = b_ih + b_hh

            # ---- Hoisted input projection: all T timesteps in one matmul ----
            seq_in = x_ref[...] if layer == 0 else seq_scr[...]   # (T*B, F)
            gx_scr[...] = (
                jnp.dot(seq_in, w_ih, preferred_element_type=jnp.float32) + bias
            )

            write_seq = layer != L - 1   # top layer's sequence is never needed

            def step(t, carry, w_hh=w_hh, write_seq=write_seq):
                h, c = carry
                row = t * B
                gates = gx_scr[pl.ds(row, B), :] + jnp.dot(
                    h, w_hh, preferred_element_type=jnp.float32
                )  # (B, 4H)
                # PyTorch gate order: i, f, g, o
                i_g = _sigmoid(gates[:, 0 * H:1 * H])
                f_g = _sigmoid(gates[:, 1 * H:2 * H])
                g_g = jnp.tanh(gates[:, 2 * H:3 * H])
                o_g = _sigmoid(gates[:, 3 * H:4 * H])
                c_new = f_g * c + i_g * g_g
                h_new = o_g * jnp.tanh(c_new)
                if write_seq:
                    seq_scr[pl.ds(row, B), :] = h_new
                return (h_new, c_new)

            h0 = jnp.zeros((B, H), jnp.float32)
            c0 = jnp.zeros((B, H), jnp.float32)
            if T <= 32:
                # Fully static unroll: every per-timestep slice has a static
                # sublane offset (cheapest lowering; T is small).
                h, c = h0, c0
                for t in range(T):
                    h, c = step(t, (h, c))
                h_last = h
            else:
                h_last, _ = jax.lax.fori_loop(0, T, step, (h0, c0), unroll=8)

        # ---- Fused final Linear on the top layer's last hidden state ----
        out_ref[...] = (
            jnp.dot(h_last, w_lin_ref[...], preferred_element_type=jnp.float32)
            + b_lin_ref[...]
        ).astype(out_ref.dtype)

    return kernel


# ----------------------------------------------------------------------------
# Wrapper
# ----------------------------------------------------------------------------
def lstm_model_forward_pallas(params, x):
    """Forward pass equivalent to LSTMModel.forward.

    x: (B, T, input_dim), batch_first (like the PyTorch module).
    returns: (B, output_dim)
    """
    B, T, I = x.shape
    H = params["layers"][0]["w_hh_t"].shape[0]
    O = params["w_lin_t"].shape[1]
    L = len(params["layers"])

    # Time-major 2D layout (row = t*B + b) so per-timestep slices inside the
    # kernel are contiguous sublane slices and the hoisted input projection is
    # one lane-dense 2D matmul. This is the only XLA-side data movement; all
    # intermediate sequences stay in VMEM inside the fused kernel.
    x2d = jnp.transpose(x.astype(jnp.float32), (1, 0, 2)).reshape(T * B, I)

    args = [x2d]
    for lp in params["layers"]:
        args += [lp["w_ih_t"], lp["w_hh_t"], lp["bias"]]
    args += [params["w_lin_t"], params["b_lin"]]

    in_specs = [pl.BlockSpec(a.shape, lambda i: (0, 0)) for a in args]

    kernel = _make_fused_lstm_kernel(T, B, H, L)

    return pl.pallas_call(
        kernel,
        out_shape=jax.ShapeDtypeStruct((B, O), jnp.float32),
        grid=(1,),
        in_specs=in_specs,
        out_specs=pl.BlockSpec((B, O), lambda i: (0, 0)),
        scratch_shapes=[
            pltpu.VMEM((T * B, 4 * H), jnp.float32),   # hoisted gates_x
            pltpu.VMEM((T * B, H), jnp.float32),       # layer hidden sequence
        ],
        compiler_params=pltpu.CompilerParams(
            dimension_semantics=("arbitrary",),
        ),
    )(*args)


@jax.jit
def lstm_model_forward(params, x):
    return lstm_model_forward_pallas(params, x)


# ----------------------------------------------------------------------------
# Parameter init (mimics PyTorch's U(-1/sqrt(H), 1/sqrt(H)))
# ----------------------------------------------------------------------------
def init_params(key, input_dim, hidden_dim, layer_dim, output_dim):
    params = {"layers": []}
    bound = 1.0 / np.sqrt(hidden_dim)
    for layer in range(layer_dim):
        in_dim = input_dim if layer == 0 else hidden_dim
        key, k1, k2, k3, k4 = jax.random.split(key, 5)
        w_ih = jax.random.uniform(k1, (4 * hidden_dim, in_dim), jnp.float32, -bound, bound)
        w_hh = jax.random.uniform(k2, (4 * hidden_dim, hidden_dim), jnp.float32, -bound, bound)
        b_ih = jax.random.uniform(k3, (4 * hidden_dim,), jnp.float32, -bound, bound)
        b_hh = jax.random.uniform(k4, (4 * hidden_dim,), jnp.float32, -bound, bound)
        params["layers"].append(
            {
                "w_ih_t": w_ih.T,                 # (I, 4H)
                "w_hh_t": w_hh.T,                 # (H, 4H)
                "bias": (b_ih + b_hh)[None, :],   # (1, 4H)
            }
        )
    key, k1, k2 = jax.random.split(key, 3)
    w_lin = jax.random.uniform(k1, (output_dim, hidden_dim), jnp.float32, -bound, bound)
    b_lin = jax.random.uniform(k2, (output_dim,), jnp.float32, -bound, bound)
    params["w_lin_t"] = w_lin.T          # (H, O)
    params["b_lin"] = b_lin[None, :]     # (1, O)
    return params


# ----------------------------------------------------------------------------
# Pure-JAX reference (sanity check of kernel semantics)
# ----------------------------------------------------------------------------
def lstm_model_reference(params, x):
    x_tm = jnp.transpose(x, (1, 0, 2)).astype(jnp.float32)
    h_seq = x_tm
    for layer_p in params["layers"]:
        B = h_seq.shape[1]
        H = layer_p["w_hh_t"].shape[0]

        def step(carry, xt, lp=layer_p):
            h, c = carry
            gates = xt @ lp["w_ih_t"] + h @ lp["w_hh_t"] + lp["bias"]
            i_g = jax.nn.sigmoid(gates[:, 0 * H:1 * H])
            f_g = jax.nn.sigmoid(gates[:, 1 * H:2 * H])
            g_g = jnp.tanh(gates[:, 2 * H:3 * H])
            o_g = jax.nn.sigmoid(gates[:, 3 * H:4 * H])
            c_new = f_g * c + i_g * g_g
            h_new = o_g * jnp.tanh(c_new)
            return (h_new, c_new), h_new

        init = (jnp.zeros((B, H), jnp.float32), jnp.zeros((B, H), jnp.float32))
        _, h_seq = jax.lax.scan(step, init, h_seq)
    return h_seq[-1] @ params["w_lin_t"] + params["b_lin"]


# ----------------------------------------------------------------------------
if __name__ == "__main__":
    # Small shapes consistent with the module: x is (B, T, input_dim).
    B, T = 2, 8
    input_dim, hidden_dim, layer_dim, output_dim = 16, 32, 2, 4

    key = jax.random.PRNGKey(0)
    key, pkey, xkey = jax.random.split(key, 3)
    params = init_params(pkey, input_dim, hidden_dim, layer_dim, output_dim)
    x = jax.random.normal(xkey, (B, T, input_dim), jnp.float32)

    out = lstm_model_forward(params, x)
    out = jax.block_until_ready(out)

    ref = lstm_model_reference(params, x)
    np.testing.assert_allclose(np.asarray(out), np.asarray(ref), rtol=1e-4, atol=1e-5)

    assert out.shape == (B, output_dim)
    print("KERNEL_OK")
</pallas_src>

<mosaic_0001>
module attributes {stable_mosaic.version = 11 : i64} {
  func.func @kernel(%arg0: i32, %arg1: memref<16x16xf32, #tpu.memory_space<vmem>>, %arg2: memref<16x128xf32, #tpu.memory_space<vmem>>, %arg3: memref<32x128xf32, #tpu.memory_space<vmem>>, %arg4: memref<1x128xf32, #tpu.memory_space<vmem>>, %arg5: memref<32x128xf32, #tpu.memory_space<vmem>>, %arg6: memref<32x128xf32, #tpu.memory_space<vmem>>, %arg7: memref<1x128xf32, #tpu.memory_space<vmem>>, %arg8: memref<32x4xf32, #tpu.memory_space<vmem>>, %arg9: memref<1x4xf32, #tpu.memory_space<vmem>>, %arg10: memref<2x4xf32, #tpu.memory_space<vmem>>, %arg11: memref<16x128xf32, #tpu.memory_space<vmem>>, %arg12: memref<16x32xf32, #tpu.memory_space<vmem>>) attributes {dimension_semantics = [#tpu.dimension_semantics<arbitrary>], iteration_bounds = array<i64: 1>, scalar_prefetch = 0 : i64, scratch_operands = 2 : i64, tpu.core_type = #tpu.core_type<tc>, window_params = [{pipeline_mode = #tpu.pipeline_mode<synchronous>, transform_indices = @transform_0, window_bounds = array<i64: 16, 16>}, {pipeline_mode = #tpu.pipeline_mode<synchronous>, transform_indices = @transform_1, window_bounds = array<i64: 16, 128>}, {pipeline_mode = #tpu.pipeline_mode<synchronous>, transform_indices = @transform_2, window_bounds = array<i64: 32, 128>}, {pipeline_mode = #tpu.pipeline_mode<synchronous>, transform_indices = @transform_3, window_bounds = array<i64: 1, 128>}, {pipeline_mode = #tpu.pipeline_mode<synchronous>, transform_indices = @transform_4, window_bounds = array<i64: 32, 128>}, {pipeline_mode = #tpu.pipeline_mode<synchronous>, transform_indices = @transform_5, window_bounds = array<i64: 32, 128>}, {pipeline_mode = #tpu.pipeline_mode<synchronous>, transform_indices = @transform_6, window_bounds = array<i64: 1, 128>}, {pipeline_mode = #tpu.pipeline_mode<synchronous>, transform_indices = @transform_7, window_bounds = array<i64: 32, 4>}, {pipeline_mode = #tpu.pipeline_mode<synchronous>, transform_indices = @transform_8, window_bounds = array<i64: 1, 4>}, {pipeline_mode = #tpu.pipeline_mode<synchronous>, transform_indices = @transform_9, window_bounds = array<i64: 2, 4>}]} {
    %c0 = arith.constant 0 : index
    %c0_0 = arith.constant 0 : index
    %0 = vector.load %arg2[%c0, %c0_0] : memref<16x128xf32, #tpu.memory_space<vmem>>, vector<16x128xf32>
    %c0_1 = arith.constant 0 : index
    %c0_2 = arith.constant 0 : index
    %1 = vector.load %arg3[%c0_1, %c0_2] : memref<32x128xf32, #tpu.memory_space<vmem>>, vector<32x128xf32>
    %c0_3 = arith.constant 0 : index
    %c0_4 = arith.constant 0 : index
    %2 = vector.load %arg4[%c0_3, %c0_4] : memref<1x128xf32, #tpu.memory_space<vmem>>, vector<1x128xf32>
    %c0_5 = arith.constant 0 : index
    %c0_6 = arith.constant 0 : index
    %3 = vector.load %arg1[%c0_5, %c0_6] : memref<16x16xf32, #tpu.memory_space<vmem>>, vector<16x16xf32>
    %cst = arith.constant dense<0.000000e+00> : vector<16x128xf32>
    %4 = tpu.matmul %3, %0, %cst {dimension_numbers = #tpu.dot_dimension_numbers<[1], [0], [0], [1], [0, 0, 1, 1], [], []>} : vector<16x16xf32>, vector<16x128xf32>, vector<16x128xf32> -> vector<16x128xf32>
    %5 = vector.broadcast %2 : vector<1x128xf32> to vector<16x128xf32>
    %6 = arith.addf %4, %5 : vector<16x128xf32>
    %c0_7 = arith.constant 0 : index
    %c0_8 = arith.constant 0 : index
    %7 = vector.load %arg11[%c0_7, %c0_8] : memref<16x128xf32, #tpu.memory_space<vmem>>, vector<16x128xf32>
    tpu.vector_store %arg11[%c0_7, %c0_8], %6 {strides = array<i32>} : memref<16x128xf32, #tpu.memory_space<vmem>>, vector<16x128xf32>,
    %cst_9 = arith.constant 0.000000e+00 : f32
    %8 = vector.broadcast %cst_9 : f32 to vector<2x32xf32>
    %cst_10 = arith.constant 0.000000e+00 : f32
    %9 = vector.broadcast %cst_10 : f32 to vector<2x32xf32>
    %c0_11 = arith.constant 0 : index
    %c0_12 = arith.constant 0 : index
    %10 = vector.load %arg11[%c0_11, %c0_12] : memref<16x128xf32, #tpu.memory_space<vmem>>, vector<2x128xf32>
    %cst_13 = arith.constant dense<0.000000e+00> : vector<2x128xf32>
    %11 = tpu.matmul %8, %1, %cst_13 {dimension_numbers = #tpu.dot_dimension_numbers<[1], [0], [0], [1], [0, 0, 1, 1], [], []>} : vector<2x32xf32>, vector<32x128xf32>, vector<2x128xf32> -> vector<2x128xf32>
    %12 = arith.addf %10, %11 : vector<2x128xf32>
    %13 = vector.extract_strided_slice %12 {offsets = [0, 0], sizes = [2, 32], strides = [1, 1]} : vector<2x128xf32> to vector<2x32xf32>
    %cst_14 = arith.constant 5.000000e-01 : f32
    %14 = vector.broadcast %cst_14 : f32 to vector<2x32xf32>
    %15 = arith.mulf %14, %13 : vector<2x32xf32>
    %16 = math.tanh %15 : vector<2x32xf32>
    %cst_15 = arith.constant 5.000000e-01 : f32
    %17 = vector.broadcast %cst_15 : f32 to vector<2x32xf32>
    %18 = arith.mulf %17, %16 : vector<2x32xf32>
    %cst_16 = arith.constant 5.000000e-01 : f32
    %19 = vector.broadcast %cst_16 : f32 to vector<2x32xf32>
    %20 = arith.addf %18, %19 : vector<2x32xf32>
    %21 = vector.extract_strided_slice %12 {offsets = [0, 32], sizes = [2, 32], strides = [1, 1]} : vector<2x128xf32> to vector<2x32xf32>
    %cst_17 = arith.constant 5.000000e-01 : f32
    %22 = vector.broadcast %cst_17 : f32 to vector<2x32xf32>
    %23 = arith.mulf %22, %21 : vector<2x32xf32>
    %24 = math.tanh %23 : vector<2x32xf32>
    %cst_18 = arith.constant 5.000000e-01 : f32
    %25 = vector.broadcast %cst_18 : f32 to vector<2x32xf32>
    %26 = arith.mulf %25, %24 : vector<2x32xf32>
    %cst_19 = arith.constant 5.000000e-01 : f32
    %27 = vector.broadcast %cst_19 : f32 to vector<2x32xf32>
    %28 = arith.addf %26, %27 : vector<2x32xf32>
    %29 = vector.extract_strided_slice %12 {offsets = [0, 64], sizes = [2, 32], strides = [1, 1]} : vector<2x128xf32> to vector<2x32xf32>
    %30 = math.tanh %29 : vector<2x32xf32>
    %31 = vector.extract_strided_slice %12 {offsets = [0, 96], sizes = [2, 32], strides = [1, 1]} : vector<2x128xf32> to vector<2x32xf32>
    %cst_20 = arith.constant 5.000000e-01 : f32
    %32 = vector.broadcast %cst_20 : f32 to vector<2x32xf32>
    %33 = arith.mulf %32, %31 : vector<2x32xf32>
    %34 = math.tanh %33 : vector<2x32xf32>
    %cst_21 = arith.constant 5.000000e-01 : f32
    %35 = vector.broadcast %cst_21 : f32 to vector<2x32xf32>
    %36 = arith.mulf %35, %34 : vector<2x32xf32>
    %cst_22 = arith.constant 5.000000e-01 : f32
    %37 = vector.broadcast %cst_22 : f32 to vector<2x32xf32>
    %38 = arith.addf %36, %37 : vector<2x32xf32>
    %39 = arith.mulf %28, %9 : vector<2x32xf32>
    %40 = arith.mulf %20, %30 : vector<2x32xf32>
    %41 = arith.addf %39, %40 : vector<2x32xf32>
    %42 = math.tanh %41 : vector<2x32xf32>
    %43 = arith.mulf %38, %42 : vector<2x32xf32>
    %c0_23 = arith.constant 0 : index
    %c0_24 = arith.constant 0 : index
    %44 = vector.load %arg12[%c0_23, %c0_24] : memref<16x32xf32, #tpu.memory_space<vmem>>, vector<2x32xf32>
    tpu.vector_store %arg12[%c0_23, %c0_24], %43 {strides = array<i32>} : memref<16x32xf32, #tpu.memory_space<vmem>>, vector<2x32xf32>,
    %c2 = arith.constant 2 : index
    %c0_25 = arith.constant 0 : index
    %45 = vector.load %arg11[%c2, %c0_25] : memref<16x128xf32, #tpu.memory_space<vmem>>, vector<2x128xf32>
    %cst_26 = arith.constant dense<0.000000e+00> : vector<2x128xf32>
    %46 = tpu.matmul %43, %1, %cst_26 {dimension_numbers = #tpu.dot_dimension_numbers<[1], [0], [0], [1], [0, 0, 1, 1], [], []>} : vector<2x32xf32>, vector<32x128xf32>, vector<2x128xf32> -> vector<2x128xf32>
    %47 = arith.addf %45, %46 : vector<2x128xf32>
    %48 = vector.extract_strided_slice %47 {offsets = [0, 0], sizes = [2, 32], strides = [1, 1]} : vector<2x128xf32> to vector<2x32xf32>
    %cst_27 = arith.constant 5.000000e-01 : f32
    %49 = vector.broadcast %cst_27 : f32 to vector<2x32xf32>
    %50 = arith.mulf %49, %48 : vector<2x32xf32>
    %51 = math.tanh %50 : vector<2x32xf32>
    %cst_28 = arith.constant 5.000000e-01 : f32
    %52 = vector.broadcast %cst_28 : f32 to vector<2x32xf32>
    %53 = arith.mulf %52, %51 : vector<2x32xf32>
    %cst_29 = arith.constant 5.000000e-01 : f32
    %54 = vector.broadcast %cst_29 : f32 to vector<2x32xf32>
    %55 = arith.addf %53, %54 : vector<2x32xf32>
    %56 = vector.extract_strided_slice %47 {offsets = [0, 32], sizes = [2, 32], strides = [1, 1]} : vector<2x128xf32> to vector<2x32xf32>
    %cst_30 = arith.constant 5.000000e-01 : f32
    %57 = vector.broadcast %cst_30 : f32 to vector<2x32xf32>
    %58 = arith.mulf %57, %56 : vector<2x32xf32>
    %59 = math.tanh %58 : vector<2x32xf32>
    %cst_31 = arith.constant 5.000000e-01 : f32
    %60 = vector.broadcast %cst_31 : f32 to vector<2x32xf32>
    %61 = arith.mulf %60, %59 : vector<2x32xf32>
    %cst_32 = arith.constant 5.000000e-01 : f32
    %62 = vector.broadcast %cst_32 : f32 to vector<2x32xf32>
    %63 = arith.addf %61, %62 : vector<2x32xf32>
    %64 = vector.extract_strided_slice %47 {offsets = [0, 64], sizes = [2, 32], strides = [1, 1]} : vector<2x128xf32> to vector<2x32xf32>
    %65 = math.tanh %64 : vector<2x32xf32>
    %66 = vector.extract_strided_slice %47 {offsets = [0, 96], sizes = [2, 32], strides = [1, 1]} : vector<2x128xf32> to vector<2x32xf32>
    %cst_33 = arith.constant 5.000000e-01 : f32
    %67 = vector.broadcast %cst_33 : f32 to vector<2x32xf32>
    %68 = arith.mulf %67, %66 : vector<2x32xf32>
    %69 = math.tanh %68 : vector<2x32xf32>
    %cst_34 = arith.constant 5.000000e-01 : f32
    %70 = vector.broadcast %cst_34 : f32 to vector<2x32xf32>
    %71 = arith.mulf %70, %69 : vector<2x32xf32>
    %cst_35 = arith.constant 5.000000e-01 : f32
    %72 = vector.broadcast %cst_35 : f32 to vector<2x32xf32>
    %73 = arith.addf %71, %72 : vector<2x32xf32>
    %74 = arith.mulf %63, %41 : vector<2x32xf32>
    %75 = arith.mulf %55, %65 : vector<2x32xf32>
    %76 = arith.addf %74, %75 : vector<2x32xf32>
    %77 = math.tanh %76 : vector<2x32xf32>
    %78 = arith.mulf %73, %77 : vector<2x32xf32>
    %c2_36 = arith.constant 2 : index
    %c0_37 = arith.constant 0 : index
    %79 = vector.load %arg12[%c2_36, %c0_37] : memref<16x32xf32, #tpu.memory_space<vmem>>, vector<2x32xf32>
    tpu.vector_store %arg12[%c2_36, %c0_37], %78 {strides = array<i32>} : memref<16x32xf32, #tpu.memory_space<vmem>>, vector<2x32xf32>,
    %c4 = arith.constant 4 : index
    %c0_38 = arith.constant 0 : index
    %80 = vector.load %arg11[%c4, %c0_38] : memref<16x128xf32, #tpu.memory_space<vmem>>, vector<2x128xf32>
    %cst_39 = arith.constant dense<0.000000e+00> : vector<2x128xf32>
    %81 = tpu.matmul %78, %1, %cst_39 {dimension_numbers = #tpu.dot_dimension_numbers<[1], [0], [0], [1], [0, 0, 1, 1], [], []>} : vector<2x32xf32>, vector<32x128xf32>, vector<2x128xf32> -> vector<2x128xf32>
    %82 = arith.addf %80, %81 : vector<2x128xf32>
    %83 = vector.extract_strided_slice %82 {offsets = [0, 0], sizes = [2, 32], strides = [1, 1]} : vector<2x128xf32> to vector<2x32xf32>
    %cst_40 = arith.constant 5.000000e-01 : f32
    %84 = vector.broadcast %cst_40 : f32 to vector<2x32xf32>
    %85 = arith.mulf %84, %83 : vector<2x32xf32>
    %86 = math.tanh %85 : vector<2x32xf32>
    %cst_41 = arith.constant 5.000000e-01 : f32
    %87 = vector.broadcast %cst_41 : f32 to vector<2x32xf32>
    %88 = arith.mulf %87, %86 : vector<2x32xf32>
    %cst_42 = arith.constant 5.000000e-01 : f32
    %89 = vector.broadcast %cst_42 : f32 to vector<2x32xf32>
    %90 = arith.addf %88, %89 : vector<2x32xf32>
    %91 = vector.extract_strided_slice %82 {offsets = [0, 32], sizes = [2, 32], strides = [1, 1]} : vector<2x128xf32> to vector<2x32xf32>
    %cst_43 = arith.constant 5.000000e-01 : f32
    %92 = vector.broadcast %cst_43 : f32 to vector<2x32xf32>
    %93 = arith.mulf %92, %91 : vector<2x32xf32>
    %94 = math.tanh %93 : vector<2x32xf32>
    %cst_44 = arith.constant 5.000000e-01 : f32
    %95 = vector.broadcast %cst_44 : f32 to vector<2x32xf32>
    %96 = arith.mulf %95, %94 : vector<2x32xf32>
    %cst_45 = arith.constant 5.000000e-01 : f32
    %97 = vector.broadcast %cst_45 : f32 to vector<2x32xf32>
    %98 = arith.addf %96, %97 : vector<2x32xf32>
    %99 = vector.extract_strided_slice %82 {offsets = [0, 64], sizes = [2, 32], strides = [1, 1]} : vector<2x128xf32> to vector<2x32xf32>
    %100 = math.tanh %99 : vector<2x32xf32>
    %101 = vector.extract_strided_slice %82 {offsets = [0, 96], sizes = [2, 32], strides = [1, 1]} : vector<2x128xf32> to vector<2x32xf32>
    %cst_46 = arith.constant 5.000000e-01 : f32
    %102 = vector.broadcast %cst_46 : f32 to vector<2x32xf32>
    %103 = arith.mulf %102, %101 : vector<2x32xf32>
    %104 = math.tanh %103 : vector<2x32xf32>
    %cst_47 = arith.constant 5.000000e-01 : f32
    %105 = vector.broadcast %cst_47 : f32 to vector<2x32xf32>
    %106 = arith.mulf %105, %104 : vector<2x32xf32>
    %cst_48 = arith.constant 5.000000e-01 : f32
    %107 = vector.broadcast %cst_48 : f32 to vector<2x32xf32>
    %108 = arith.addf %106, %107 : vector<2x32xf32>
    %109 = arith.mulf %98, %76 : vector<2x32xf32>
    %110 = arith.mulf %90, %100 : vector<2x32xf32>
    %111 = arith.addf %109, %110 : vector<2x32xf32>
    %112 = math.tanh %111 : vector<2x32xf32>
    %113 = arith.mulf %108, %112 : vector<2x32xf32>
    %c4_49 = arith.constant 4 : index
    %c0_50 = arith.constant 0 : index
    %114 = vector.load %arg12[%c4_49, %c0_50] : memref<16x32xf32, #tpu.memory_space<vmem>>, vector<2x32xf32>
    tpu.vector_store %arg12[%c4_49, %c0_50], %113 {strides = array<i32>} : memref<16x32xf32, #tpu.memory_space<vmem>>, vector<2x32xf32>,
    %c6 = arith.constant 6 : index
    %c0_51 = arith.constant 0 : index
    %115 = vector.load %arg11[%c6, %c0_51] : memref<16x128xf32, #tpu.memory_space<vmem>>, vector<2x128xf32>
    %cst_52 = arith.constant dense<0.000000e+00> : vector<2x128xf32>
    %116 = tpu.matmul %113, %1, %cst_52 {dimension_numbers = #tpu.dot_dimension_numbers<[1], [0], [0], [1], [0, 0, 1, 1], [], []>} : vector<2x32xf32>, vector<32x128xf32>, vector<2x128xf32> -> vector<2x128xf32>
    %117 = arith.addf %115, %116 : vector<2x128xf32>
    %118 = vector.extract_strided_slice %117 {offsets = [0, 0], sizes = [2, 32], strides = [1, 1]} : vector<2x128xf32> to vector<2x32xf32>
    %cst_53 = arith.constant 5.000000e-01 : f32
    %119 = vector.broadcast %cst_53 : f32 to vector<2x32xf32>
    %120 = arith.mulf %119, %118 : vector<2x32xf32>
    %121 = math.tanh %120 : vector<2x32xf32>
    %cst_54 = arith.constant 5.000000e-01 : f32
    %122 = vector.broadcast %cst_54 : f32 to vector<2x32xf32>
    %123 = arith.mulf %122, %121 : vector<2x32xf32>
    %cst_55 = arith.constant 5.000000e-01 : f32
    %124 = vector.broadcast %cst_55 : f32 to vector<2x32xf32>
    %125 = arith.addf %123, %124 : vector<2x32xf32>
    %126 = vector.extract_strided_slice %117 {offsets = [0, 32], sizes = [2, 32], strides = [1, 1]} : vector<2x128xf32> to vector<2x32xf32>
    %cst_56 = arith.constant 5.000000e-01 : f32
    %127 = vector.broadcast %cst_56 : f32 to vector<2x32xf32>
    %128 = arith.mulf %127, %126 : vector<2x32xf32>
    %129 = math.tanh %128 : vector<2x32xf32>
    %cst_57 = arith.constant 5.000000e-01 : f32
    %130 = vector.broadcast %cst_57 : f32 to vector<2x32xf32>
    %131 = arith.mulf %130, %129 : vector<2x32xf32>
    %cst_58 = arith.constant 5.000000e-01 : f32
    %132 = vector.broadcast %cst_58 : f32 to vector<2x32xf32>
    %133 = arith.addf %131, %132 : vector<2x32xf32>
    %134 = vector.extract_strided_slice %117 {offsets = [0, 64], sizes = [2, 32], strides = [1, 1]} : vector<2x128xf32> to vector<2x32xf32>
    %135 = math.tanh %134 : vector<2x32xf32>
    %136 = vector.extract_strided_slice %117 {offsets = [0, 96], sizes = [2, 32], strides = [1, 1]} : vector<2x128xf32> to vector<2x32xf32>
    %cst_59 = arith.constant 5.000000e-01 : f32
    %137 = vector.broadcast %cst_59 : f32 to vector<2x32xf32>
    %138 = arith.mulf %137, %136 : vector<2x32xf32>
    %139 = math.tanh %138 : vector<2x32xf32>
    %cst_60 = arith.constant 5.000000e-01 : f32
    %140 = vector.broadcast %cst_60 : f32 to vector<2x32xf32>
    %141 = arith.mulf %140, %139 : vector<2x32xf32>
    %cst_61 = arith.constant 5.000000e-01 : f32
    %142 = vector.broadcast %cst_61 : f32 to vector<2x32xf32>
    %143 = arith.addf %141, %142 : vector<2x32xf32>
    %144 = arith.mulf %133, %111 : vector<2x32xf32>
    %145 = arith.mulf %125, %135 : vector<2x32xf32>
    %146 = arith.addf %144, %145 : vector<2x32xf32>
    %147 = math.tanh %146 : vector<2x32xf32>
    %148 = arith.mulf %143, %147 : vector<2x32xf32>
    %c6_62 = arith.constant 6 : index
    %c0_63 = arith.constant 0 : index
    %149 = vector.load %arg12[%c6_62, %c0_63] : memref<16x32xf32, #tpu.memory_space<vmem>>, vector<2x32xf32>
    tpu.vector_store %arg12[%c6_62, %c0_63], %148 {strides = array<i32>} : memref<16x32xf32, #tpu.memory_space<vmem>>, vector<2x32xf32>,
    %c8 = arith.constant 8 : index
    %c0_64 = arith.constant 0 : index
    %150 = vector.load %arg11[%c8, %c0_64] : memref<16x128xf32, #tpu.memory_space<vmem>>, vector<2x128xf32>
    %cst_65 = arith.constant dense<0.000000e+00> : vector<2x128xf32>
    %151 = tpu.matmul %148, %1, %cst_65 {dimension_numbers = #tpu.dot_dimension_numbers<[1], [0], [0], [1], [0, 0, 1, 1], [], []>} : vector<2x32xf32>, vector<32x128xf32>, vector<2x128xf32> -> vector<2x128xf32>
    %152 = arith.addf %150, %151 : vector<2x128xf32>
    %153 = vector.extract_strided_slice %152 {offsets = [0, 0], sizes = [2, 32], strides = [1, 1]} : vector<2x128xf32> to vector<2x32xf32>
    %cst_66 = arith.constant 5.000000e-01 : f32
    %154 = vector.broadcast %cst_66 : f32 to vector<2x32xf32>
    %155 = arith.mulf %154, %153 : vector<2x32xf32>
    %156 = math.tanh %155 : vector<2x32xf32>
    %cst_67 = arith.constant 5.000000e-01 : f32
    %157 = vector.broadcast %cst_67 : f32 to vector<2x32xf32>
    %158 = arith.mulf %157, %156 : vector<2x32xf32>
    %cst_68 = arith.constant 5.000000e-01 : f32
    %159 = vector.broadcast %cst_68 : f32 to vector<2x32xf32>
    %160 = arith.addf %158, %159 : vector<2x32xf32>
    %161 = vector.extract_strided_slice %152 {offsets = [0, 32], sizes = [2, 32], strides = [1, 1]} : vector<2x128xf32> to vector<2x32xf32>
    %cst_69 = arith.constant 5.000000e-01 : f32
    %162 = vector.broadcast %cst_69 : f32 to vector<2x32xf32>
    %163 = arith.mulf %162, %161 : vector<2x32xf32>
    %164 = math.tanh %163 : vector<2x32xf32>
    %cst_70 = arith.constant 5.000000e-01 : f32
    %165 = vector.broadcast %cst_70 : f32 to vector<2x32xf32>
    %166 = arith.mulf %165, %164 : vector<2x32xf32>
    %cst_71 = arith.constant 5.000000e-01 : f32
    %167 = vector.broadcast %cst_71 : f32 to vector<2x32xf32>
    %168 = arith.addf %166, %167 : vector<2x32xf32>
    %169 = vector.extract_strided_slice %152 {offsets = [0, 64], sizes = [2, 32], strides = [1, 1]} : vector<2x128xf32> to vector<2x32xf32>
    %170 = math.tanh %169 : vector<2x32xf32>
    %171 = vector.extract_strided_slice %152 {offsets = [0, 96], sizes = [2, 32], strides = [1, 1]} : vector<2x128xf32> to vector<2x32xf32>
    %cst_72 = arith.constant 5.000000e-01 : f32
    %172 = vector.broadcast %cst_72 : f32 to vector<2x32xf32>
    %173 = arith.mulf %172, %171 : vector<2x32xf32>
    %174 = math.tanh %173 : vector<2x32xf32>
    %cst_73 = arith.constant 5.000000e-01 : f32
    %175 = vector.broadcast %cst_73 : f32 to vector<2x32xf32>
    %176 = arith.mulf %175, %174 : vector<2x32xf32>
    %cst_74 = arith.constant 5.000000e-01 : f32
    %177 = vector.broadcast %cst_74 : f32 to vector<2x32xf32>
    %178 = arith.addf %176, %177 : vector<2x32xf32>
    %179 = arith.mulf %168, %146 : vector<2x32xf32>
    %180 = arith.mulf %160, %170 : vector<2x32xf32>
    %181 = arith.addf %179, %180 : vector<2x32xf32>
    %182 = math.tanh %181 : vector<2x32xf32>
    %183 = arith.mulf %178, %182 : vector<2x32xf32>
    %c8_75 = arith.constant 8 : index
    %c0_76 = arith.constant 0 : index
    %184 = vector.load %arg12[%c8_75, %c0_76] : memref<16x32xf32, #tpu.memory_space<vmem>>, vector<2x32xf32>
    tpu.vector_store %arg12[%c8_75, %c0_76], %183 {strides = array<i32>} : memref<16x32xf32, #tpu.memory_space<vmem>>, vector<2x32xf32>,
    %c10 = arith.constant 10 : index
    %c0_77 = arith.constant 0 : index
    %185 = vector.load %arg11[%c10, %c0_77] : memref<16x128xf32, #tpu.memory_space<vmem>>, vector<2x128xf32>
    %cst_78 = arith.constant dense<0.000000e+00> : vector<2x128xf32>
    %186 = tpu.matmul %183, %1, %cst_78 {dimension_numbers = #tpu.dot_dimension_numbers<[1], [0], [0], [1], [0, 0, 1, 1], [], []>} : vector<2x32xf32>, vector<32x128xf32>, vector<2x128xf32> -> vector<2x128xf32>
    %187 = arith.addf %185, %186 : vector<2x128xf32>
    %188 = vector.extract_strided_slice %187 {offsets = [0, 0], sizes = [2, 32], strides = [1, 1]} : vector<2x128xf32> to vector<2x32xf32>
    %cst_79 = arith.constant 5.000000e-01 : f32
    %189 = vector.broadcast %cst_79 : f32 to vector<2x32xf32>
    %190 = arith.mulf %189, %188 : vector<2x32xf32>
    %191 = math.tanh %190 : vector<2x32xf32>
    %cst_80 = arith.constant 5.000000e-01 : f32
    %192 = vector.broadcast %cst_80 : f32 to vector<2x32xf32>
    %193 = arith.mulf %192, %191 : vector<2x32xf32>
    %cst_81 = arith.constant 5.000000e-01 : f32
    %194 = vector.broadcast %cst_81 : f32 to vector<2x32xf32>
    %195 = arith.addf %193, %194 : vector<2x32xf32>
    %196 = vector.extract_strided_slice %187 {offsets = [0, 32], sizes = [2, 32], strides = [1, 1]} : vector<2x128xf32> to vector<2x32xf32>
    %cst_82 = arith.constant 5.000000e-01 : f32
    %197 = vector.broadcast %cst_82 : f32 to vector<2x32xf32>
    %198 = arith.mulf %197, %196 : vector<2x32xf32>
    %199 = math.tanh %198 : vector<2x32xf32>
    %cst_83 = arith.constant 5.000000e-01 : f32
    %200 = vector.broadcast %cst_83 : f32 to vector<2x32xf32>
    %201 = arith.mulf %200, %199 : vector<2x32xf32>
    %cst_84 = arith.constant 5.000000e-01 : f32
    %202 = vector.broadcast %cst_84 : f32 to vector<2x32xf32>
    %203 = arith.addf %201, %202 : vector<2x32xf32>
    %204 = vector.extract_strided_slice %187 {offsets = [0, 64], sizes = [2, 32], strides = [1, 1]} : vector<2x128xf32> to vector<2x32xf32>
    %205 = math.tanh %204 : vector<2x32xf32>
    %206 = vector.extract_strided_slice %187 {offsets = [0, 96], sizes = [2, 32], strides = [1, 1]} : vector<2x128xf32> to vector<2x32xf32>
    %cst_85 = arith.constant 5.000000e-01 : f32
    %207 = vector.broadcast %cst_85 : f32 to vector<2x32xf32>
    %208 = arith.mulf %207, %206 : vector<2x32xf32>
    %209 = math.tanh %208 : vector<2x32xf32>
    %cst_86 = arith.constant 5.000000e-01 : f32
    %210 = vector.broadcast %cst_86 : f32 to vector<2x32xf32>
    %211 = arith.mulf %210, %209 : vector<2x32xf32>
    %cst_87 = arith.constant 5.000000e-01 : f32
    %212 = vector.broadcast %cst_87 : f32 to vector<2x32xf32>
    %213 = arith.addf %211, %212 : vector<2x32xf32>
    %214 = arith.mulf %203, %181 : vector<2x32xf32>
    %215 = arith.mulf %195, %205 : vector<2x32xf32>
    %216 = arith.addf %214, %215 : vector<2x32xf32>
    %217 = math.tanh %216 : vector<2x32xf32>
    %218 = arith.mulf %213, %217 : vector<2x32xf32>
    %c10_88 = arith.constant 10 : index
    %c0_89 = arith.constant 0 : index
    %219 = vector.load %arg12[%c10_88, %c0_89] : memref<16x32xf32, #tpu.memory_space<vmem>>, vector<2x32xf32>
    tpu.vector_store %arg12[%c10_88, %c0_89], %218 {strides = array<i32>} : memref<16x32xf32, #tpu.memory_space<vmem>>, vector<2x32xf32>,
    %c12 = arith.constant 12 : index
    %c0_90 = arith.constant 0 : index
    %220 = vector.load %arg11[%c12, %c0_90] : memref<16x128xf32, #tpu.memory_space<vmem>>, vector<2x128xf32>
    %cst_91 = arith.constant dense<0.000000e+00> : vector<2x128xf32>
    %221 = tpu.matmul %218, %1, %cst_91 {dimension_numbers = #tpu.dot_dimension_numbers<[1], [0], [0], [1], [0, 0, 1, 1], [], []>} : vector<2x32xf32>, vector<32x128xf32>, vector<2x128xf32> -> vector<2x128xf32>
    %222 = arith.addf %220, %221 : vector<2x128xf32>
    %223 = vector.extract_strided_slice %222 {offsets = [0, 0], sizes = [2, 32], strides = [1, 1]} : vector<2x128xf32> to vector<2x32xf32>
    %cst_92 = arith.constant 5.000000e-01 : f32
    %224 = vector.broadcast %cst_92 : f32 to vector<2x32xf32>
    %225 = arith.mulf %224, %223 : vector<2x32xf32>
    %226 = math.tanh %225 : vector<2x32xf32>
    %cst_93 = arith.constant 5.000000e-01 : f32
    %227 = vector.broadcast %cst_93 : f32 to vector<2x32xf32>
    %228 = arith.mulf %227, %226 : vector<2x32xf32>
    %cst_94 = arith.constant 5.000000e-01 : f32
    %229 = vector.broadcast %cst_94 : f32 to vector<2x32xf32>
    %230 = arith.addf %228, %229 : vector<2x32xf32>
    %231 = vector.extract_strided_slice %222 {offsets = [0, 32], sizes = [2, 32], strides = [1, 1]} : vector<2x128xf32> to vector<2x32xf32>
    %cst_95 = arith.constant 5.000000e-01 : f32
    %232 = vector.broadcast %cst_95 : f32 to vector<2x32xf32>
    %233 = arith.mulf %232, %231 : vector<2x32xf32>
    %234 = math.tanh %233 : vector<2x32xf32>
    %cst_96 = arith.constant 5.000000e-01 : f32
    %235 = vector.broadcast %cst_96 : f32 to vector<2x32xf32>
    %236 = arith.mulf %235, %234 : vector<2x32xf32>
    %cst_97 = arith.constant 5.000000e-01 : f32
    %237 = vector.broadcast %cst_97 : f32 to vector<2x32xf32>
    %238 = arith.addf %236, %237 : vector<2x32xf32>
    %239 = vector.extract_strided_slice %222 {offsets = [0, 64], sizes = [2, 32], strides = [1, 1]} : vector<2x128xf32> to vector<2x32xf32>
    %240 = math.tanh %239 : vector<2x32xf32>
    %241 = vector.extract_strided_slice %222 {offsets = [0, 96], sizes = [2, 32], strides = [1, 1]} : vector<2x128xf32> to vector<2x32xf32>
    %cst_98 = arith.constant 5.000000e-01 : f32
    %242 = vector.broadcast %cst_98 : f32 to vector<2x32xf32>
    %243 = arith.mulf %242, %241 : vector<2x32xf32>
    %244 = math.tanh %243 : vector<2x32xf32>
    %cst_99 = arith.constant 5.000000e-01 : f32
    %245 = vector.broadcast %cst_99 : f32 to vector<2x32xf32>
    %246 = arith.mulf %245, %244 : vector<2x32xf32>
    %cst_100 = arith.constant 5.000000e-01 : f32
    %247 = vector.broadcast %cst_100 : f32 to vector<2x32xf32>
    %248 = arith.addf %246, %247 : vector<2x32xf32>
    %249 = arith.mulf %238, %216 : vector<2x32xf32>
    %250 = arith.mulf %230, %240 : vector<2x32xf32>
    %251 = arith.addf %249, %250 : vector<2x32xf32>
    %252 = math.tanh %251 : vector<2x32xf32>
    %253 = arith.mulf %248, %252 : vector<2x32xf32>
    %c12_101 = arith.constant 12 : index
    %c0_102 = arith.constant 0 : index
    %254 = vector.load %arg12[%c12_101, %c0_102] : memref<16x32xf32, #tpu.memory_space<vmem>>, vector<2x32xf32>
    tpu.vector_store %arg12[%c12_101, %c0_102], %253 {strides = array<i32>} : memref<16x32xf32, #tpu.memory_space<vmem>>, vector<2x32xf32>,
    %c14 = arith.constant 14 : index
    %c0_103 = arith.constant 0 : index
    %255 = vector.load %arg11[%c14, %c0_103] : memref<16x128xf32, #tpu.memory_space<vmem>>, vector<2x128xf32>
    %cst_104 = arith.constant dense<0.000000e+00> : vector<2x128xf32>
    %256 = tpu.matmul %253, %1, %cst_104 {dimension_numbers = #tpu.dot_dimension_numbers<[1], [0], [0], [1], [0, 0, 1, 1], [], []>} : vector<2x32xf32>, vector<32x128xf32>, vector<2x128xf32> -> vector<2x128xf32>
    %257 = arith.addf %255, %256 : vector<2x128xf32>
    %258 = vector.extract_strided_slice %257 {offsets = [0, 0], sizes = [2, 32], strides = [1, 1]} : vector<2x128xf32> to vector<2x32xf32>
    %cst_105 = arith.constant 5.000000e-01 : f32
    %259 = vector.broadcast %cst_105 : f32 to vector<2x32xf32>
    %260 = arith.mulf %259, %258 : vector<2x32xf32>
    %261 = math.tanh %260 : vector<2x32xf32>
    %cst_106 = arith.constant 5.000000e-01 : f32
    %262 = vector.broadcast %cst_106 : f32 to vector<2x32xf32>
    %263 = arith.mulf %262, %261 : vector<2x32xf32>
    %cst_107 = arith.constant 5.000000e-01 : f32
    %264 = vector.broadcast %cst_107 : f32 to vector<2x32xf32>
    %265 = arith.addf %263, %264 : vector<2x32xf32>
    %266 = vector.extract_strided_slice %257 {offsets = [0, 32], sizes = [2, 32], strides = [1, 1]} : vector<2x128xf32> to vector<2x32xf32>
    %cst_108 = arith.constant 5.000000e-01 : f32
    %267 = vector.broadcast %cst_108 : f32 to vector<2x32xf32>
    %268 = arith.mulf %267, %266 : vector<2x32xf32>
    %269 = math.tanh %268 : vector<2x32xf32>
    %cst_109 = arith.constant 5.000000e-01 : f32
    %270 = vector.broadcast %cst_109 : f32 to vector<2x32xf32>
    %271 = arith.mulf %270, %269 : vector<2x32xf32>
    %cst_110 = arith.constant 5.000000e-01 : f32
    %272 = vector.broadcast %cst_110 : f32 to vector<2x32xf32>
    %273 = arith.addf %271, %272 : vector<2x32xf32>
    %274 = vector.extract_strided_slice %257 {offsets = [0, 64], sizes = [2, 32], strides = [1, 1]} : vector<2x128xf32> to vector<2x32xf32>
    %275 = math.tanh %274 : vector<2x32xf32>
    %276 = vector.extract_strided_slice %257 {offsets = [0, 96], sizes = [2, 32], strides = [1, 1]} : vector<2x128xf32> to vector<2x32xf32>
    %cst_111 = arith.constant 5.000000e-01 : f32
    %277 = vector.broadcast %cst_111 : f32 to vector<2x32xf32>
    %278 = arith.mulf %277, %276 : vector<2x32xf32>
    %279 = math.tanh %278 : vector<2x32xf32>
    %cst_112 = arith.constant 5.000000e-01 : f32
    %280 = vector.broadcast %cst_112 : f32 to vector<2x32xf32>
    %281 = arith.mulf %280, %279 : vector<2x32xf32>
    %cst_113 = arith.constant 5.000000e-01 : f32
    %282 = vector.broadcast %cst_113 : f32 to vector<2x32xf32>
    %283 = arith.addf %281, %282 : vector<2x32xf32>
    %284 = arith.mulf %273, %251 : vector<2x32xf32>
    %285 = arith.mulf %265, %275 : vector<2x32xf32>
    %286 = arith.addf %284, %285 : vector<2x32xf32>
    %287 = math.tanh %286 : vector<2x32xf32>
    %288 = arith.mulf %283, %287 : vector<2x32xf32>
    %c14_114 = arith.constant 14 : index
    %c0_115 = arith.constant 0 : index
    %289 = vector.load %arg12[%c14_114, %c0_115] : memref<16x32xf32, #tpu.memory_space<vmem>>, vector<2x32xf32>
    tpu.vector_store %arg12[%c14_114, %c0_115], %288 {strides = array<i32>} : memref<16x32xf32, #tpu.memory_space<vmem>>, vector<2x32xf32>,
    %c0_116 = arith.constant 0 : index
    %c0_117 = arith.constant 0 : index
    %290 = vector.load %arg5[%c0_116, %c0_117] : memref<32x128xf32, #tpu.memory_space<vmem>>, vector<32x128xf32>
    %c0_118 = arith.constant 0 : index
    %c0_119 = arith.constant 0 : index
    %291 = vector.load %arg6[%c0_118, %c0_119] : memref<32x128xf32, #tpu.memory_space<vmem>>, vector<32x128xf32>
    %c0_120 = arith.constant 0 : index
    %c0_121 = arith.constant 0 : index
    %292 = vector.load %arg7[%c0_120, %c0_121] : memref<1x128xf32, #tpu.memory_space<vmem>>, vector<1x128xf32>
    %c0_122 = arith.constant 0 : index
    %c0_123 = arith.constant 0 : index
    %293 = vector.load %arg12[%c0_122, %c0_123] : memref<16x32xf32, #tpu.memory_space<vmem>>, vector<16x32xf32>
    %cst_124 = arith.constant dense<0.000000e+00> : vector<16x128xf32>
    %294 = tpu.matmul %293, %290, %cst_124 {dimension_numbers = #tpu.dot_dimension_numbers<[1], [0], [0], [1], [0, 0, 1, 1], [], []>} : vector<16x32xf32>, vector<32x128xf32>, vector<16x128xf32> -> vector<16x128xf32>
    %295 = vector.broadcast %292 : vector<1x128xf32> to vector<16x128xf32>
    %296 = arith.addf %294, %295 : vector<16x128xf32>
    %c0_125 = arith.constant 0 : index
    %c0_126 = arith.constant 0 : index
    %297 = vector.load %arg11[%c0_125, %c0_126] : memref<16x128xf32, #tpu.memory_space<vmem>>, vector<16x128xf32>
    tpu.vector_store %arg11[%c0_125, %c0_126], %296 {strides = array<i32>} : memref<16x128xf32, #tpu.memory_space<vmem>>, vector<16x128xf32>,
    %cst_127 = arith.constant 0.000000e+00 : f32
    %298 = vector.broadcast %cst_127 : f32 to vector<2x32xf32>
    %cst_128 = arith.constant 0.000000e+00 : f32
    %299 = vector.broadcast %cst_128 : f32 to vector<2x32xf32>
    %c0_129 = arith.constant 0 : index
    %c0_130 = arith.constant 0 : index
    %300 = vector.load %arg11[%c0_129, %c0_130] : memref<16x128xf32, #tpu.memory_space<vmem>>, vector<2x128xf32>
    %cst_131 = arith.constant dense<0.000000e+00> : vector<2x128xf32>
    %301 = tpu.matmul %298, %291, %cst_131 {dimension_numbers = #tpu.dot_dimension_numbers<[1], [0], [0], [1], [0, 0, 1, 1], [], []>} : vector<2x32xf32>, vector<32x128xf32>, vector<2x128xf32> -> vector<2x128xf32>
    %302 = arith.addf %300, %301 : vector<2x128xf32>
    %303 = vector.extract_strided_slice %302 {offsets = [0, 0], sizes = [2, 32], strides = [1, 1]} : vector<2x128xf32> to vector<2x32xf32>
    %cst_132 = arith.constant 5.000000e-01 : f32
    %304 = vector.broadcast %cst_132 : f32 to vector<2x32xf32>
    %305 = arith.mulf %304, %303 : vector<2x32xf32>
    %306 = math.tanh %305 : vector<2x32xf32>
    %cst_133 = arith.constant 5.000000e-01 : f32
    %307 = vector.broadcast %cst_133 : f32 to vector<2x32xf32>
    %308 = arith.mulf %307, %306 : vector<2x32xf32>
    %cst_134 = arith.constant 5.000000e-01 : f32
    %309 = vector.broadcast %cst_134 : f32 to vector<2x32xf32>
    %310 = arith.addf %308, %309 : vector<2x32xf32>
    %311 = vector.extract_strided_slice %302 {offsets = [0, 32], sizes = [2, 32], strides = [1, 1]} : vector<2x128xf32> to vector<2x32xf32>
    %cst_135 = arith.constant 5.000000e-01 : f32
    %312 = vector.broadcast %cst_135 : f32 to vector<2x32xf32>
    %313 = arith.mulf %312, %311 : vector<2x32xf32>
    %314 = math.tanh %313 : vector<2x32xf32>
    %cst_136 = arith.constant 5.000000e-01 : f32
    %315 = vector.broadcast %cst_136 : f32 to vector<2x32xf32>
    %316 = arith.mulf %315, %314 : vector<2x32xf32>
    %cst_137 = arith.constant 5.000000e-01 : f32
    %317 = vector.broadcast %cst_137 : f32 to vector<2x32xf32>
    %318 = arith.addf %316, %317 : vector<2x32xf32>
    %319 = vector.extract_strided_slice %302 {offsets = [0, 64], sizes = [2, 32], strides = [1, 1]} : vector<2x128xf32> to vector<2x32xf32>
    %320 = math.tanh %319 : vector<2x32xf32>
    %321 = vector.extract_strided_slice %302 {offsets = [0, 96], sizes = [2, 32], strides = [1, 1]} : vector<2x128xf32> to vector<2x32xf32>
    %cst_138 = arith.constant 5.000000e-01 : f32
    %322 = vector.broadcast %cst_138 : f32 to vector<2x32xf32>
    %323 = arith.mulf %322, %321 : vector<2x32xf32>
    %324 = math.tanh %323 : vector<2x32xf32>
    %cst_139 = arith.constant 5.000000e-01 : f32
    %325 = vector.broadcast %cst_139 : f32 to vector<2x32xf32>
    %326 = arith.mulf %325, %324 : vector<2x32xf32>
    %cst_140 = arith.constant 5.000000e-01 : f32
    %327 = vector.broadcast %cst_140 : f32 to vector<2x32xf32>
    %328 = arith.addf %326, %327 : vector<2x32xf32>
    %329 = arith.mulf %318, %299 : vector<2x32xf32>
    %330 = arith.mulf %310, %320 : vector<2x32xf32>
    %331 = arith.addf %329, %330 : vector<2x32xf32>
    %332 = math.tanh %331 : vector<2x32xf32>
    %333 = arith.mulf %328, %332 : vector<2x32xf32>
    %c2_141 = arith.constant 2 : index
    %c0_142 = arith.constant 0 : index
    %334 = vector.load %arg11[%c2_141, %c0_142] : memref<16x128xf32, #tpu.memory_space<vmem>>, vector<2x128xf32>
    %cst_143 = arith.constant dense<0.000000e+00> : vector<2x128xf32>
    %335 = tpu.matmul %333, %291, %cst_143 {dimension_numbers = #tpu.dot_dimension_numbers<[1], [0], [0], [1], [0, 0, 1, 1], [], []>} : vector<2x32xf32>, vector<32x128xf32>, vector<2x128xf32> -> vector<2x128xf32>
    %336 = arith.addf %334, %335 : vector<2x128xf32>
    %337 = vector.extract_strided_slice %336 {offsets = [0, 0], sizes = [2, 32], strides = [1, 1]} : vector<2x128xf32> to vector<2x32xf32>
    %cst_144 = arith.constant 5.000000e-01 : f32
    %338 = vector.broadcast %cst_144 : f32 to vector<2x32xf32>
    %339 = arith.mulf %338, %337 : vector<2x32xf32>
    %340 = math.tanh %339 : vector<2x32xf32>
    %cst_145 = arith.constant 5.000000e-01 : f32
    %341 = vector.broadcast %cst_145 : f32 to vector<2x32xf32>
    %342 = arith.mulf %341, %340 : vector<2x32xf32>
    %cst_146 = arith.constant 5.000000e-01 : f32
    %343 = vector.broadcast %cst_146 : f32 to vector<2x32xf32>
    %344 = arith.addf %342, %343 : vector<2x32xf32>
    %345 = vector.extract_strided_slice %336 {offsets = [0, 32], sizes = [2, 32], strides = [1, 1]} : vector<2x128xf32> to vector<2x32xf32>
    %cst_147 = arith.constant 5.000000e-01 : f32
    %346 = vector.broadcast %cst_147 : f32 to vector<2x32xf32>
    %347 = arith.mulf %346, %345 : vector<2x32xf32>
    %348 = math.tanh %347 : vector<2x32xf32>
    %cst_148 = arith.constant 5.000000e-01 : f32
    %349 = vector.broadcast %cst_148 : f32 to vector<2x32xf32>
    %350 = arith.mulf %349, %348 : vector<2x32xf32>
    %cst_149 = arith.constant 5.000000e-01 : f32
    %351 = vector.broadcast %cst_149 : f32 to vector<2x32xf32>
    %352 = arith.addf %350, %351 : vector<2x32xf32>
    %353 = vector.extract_strided_slice %336 {offsets = [0, 64], sizes = [2, 32], strides = [1, 1]} : vector<2x128xf32> to vector<2x32xf32>
    %354 = math.tanh %353 : vector<2x32xf32>
    %355 = vector.extract_strided_slice %336 {offsets = [0, 96], sizes = [2, 32], strides = [1, 1]} : vector<2x128xf32> to vector<2x32xf32>
    %cst_150 = arith.constant 5.000000e-01 : f32
    %356 = vector.broadcast %cst_150 : f32 to vector<2x32xf32>
    %357 = arith.mulf %356, %355 : vector<2x32xf32>
    %358 = math.tanh %357 : vector<2x32xf32>
    %cst_151 = arith.constant 5.000000e-01 : f32
    %359 = vector.broadcast %cst_151 : f32 to vector<2x32xf32>
    %360 = arith.mulf %359, %358 : vector<2x32xf32>
    %cst_152 = arith.constant 5.000000e-01 : f32
    %361 = vector.broadcast %cst_152 : f32 to vector<2x32xf32>
    %362 = arith.addf %360, %361 : vector<2x32xf32>
    %363 = arith.mulf %352, %331 : vector<2x32xf32>
    %364 = arith.mulf %344, %354 : vector<2x32xf32>
    %365 = arith.addf %363, %364 : vector<2x32xf32>
    %366 = math.tanh %365 : vector<2x32xf32>
    %367 = arith.mulf %362, %366 : vector<2x32xf32>
    %c4_153 = arith.constant 4 : index
    %c0_154 = arith.constant 0 : index
    %368 = vector.load %arg11[%c4_153, %c0_154] : memref<16x128xf32, #tpu.memory_space<vmem>>, vector<2x128xf32>
    %cst_155 = arith.constant dense<0.000000e+00> : vector<2x128xf32>
    %369 = tpu.matmul %367, %291, %cst_155 {dimension_numbers = #tpu.dot_dimension_numbers<[1], [0], [0], [1], [0, 0, 1, 1], [], []>} : vector<2x32xf32>, vector<32x128xf32>, vector<2x128xf32> -> vector<2x128xf32>
    %370 = arith.addf %368, %369 : vector<2x128xf32>
    %371 = vector.extract_strided_slice %370 {offsets = [0, 0], sizes = [2, 32], strides = [1, 1]} : vector<2x128xf32> to vector<2x32xf32>
    %cst_156 = arith.constant 5.000000e-01 : f32
    %372 = vector.broadcast %cst_156 : f32 to vector<2x32xf32>
    %373 = arith.mulf %372, %371 : vector<2x32xf32>
    %374 = math.tanh %373 : vector<2x32xf32>
    %cst_157 = arith.constant 5.000000e-01 : f32
    %375 = vector.broadcast %cst_157 : f32 to vector<2x32xf32>
    %376 = arith.mulf %375, %374 : vector<2x32xf32>
    %cst_158 = arith.constant 5.000000e-01 : f32
    %377 = vector.broadcast %cst_158 : f32 to vector<2x32xf32>
    %378 = arith.addf %376, %377 : vector<2x32xf32>
    %379 = vector.extract_strided_slice %370 {offsets = [0, 32], sizes = [2, 32], strides = [1, 1]} : vector<2x128xf32> to vector<2x32xf32>
    %cst_159 = arith.constant 5.000000e-01 : f32
    %380 = vector.broadcast %cst_159 : f32 to vector<2x32xf32>
    %381 = arith.mulf %380, %379 : vector<2x32xf32>
    %382 = math.tanh %381 : vector<2x32xf32>
    %cst_160 = arith.constant 5.000000e-01 : f32
    %383 = vector.broadcast %cst_160 : f32 to vector<2x32xf32>
    %384 = arith.mulf %383, %382 : vector<2x32xf32>
    %cst_161 = arith.constant 5.000000e-01 : f32
    %385 = vector.broadcast %cst_161 : f32 to vector<2x32xf32>
    %386 = arith.addf %384, %385 : vector<2x32xf32>
    %387 = vector.extract_strided_slice %370 {offsets = [0, 64], sizes = [2, 32], strides = [1, 1]} : vector<2x128xf32> to vector<2x32xf32>
    %388 = math.tanh %387 : vector<2x32xf32>
    %389 = vector.extract_strided_slice %370 {offsets = [0, 96], sizes = [2, 32], strides = [1, 1]} : vector<2x128xf32> to vector<2x32xf32>
    %cst_162 = arith.constant 5.000000e-01 : f32
    %390 = vector.broadcast %cst_162 : f32 to vector<2x32xf32>
    %391 = arith.mulf %390, %389 : vector<2x32xf32>
    %392 = math.tanh %391 : vector<2x32xf32>
    %cst_163 = arith.constant 5.000000e-01 : f32
    %393 = vector.broadcast %cst_163 : f32 to vector<2x32xf32>
    %394 = arith.mulf %393, %392 : vector<2x32xf32>
    %cst_164 = arith.constant 5.000000e-01 : f32
    %395 = vector.broadcast %cst_164 : f32 to vector<2x32xf32>
    %396 = arith.addf %394, %395 : vector<2x32xf32>
    %397 = arith.mulf %386, %365 : vector<2x32xf32>
    %398 = arith.mulf %378, %388 : vector<2x32xf32>
    %399 = arith.addf %397, %398 : vector<2x32xf32>
    %400 = math.tanh %399 : vector<2x32xf32>
    %401 = arith.mulf %396, %400 : vector<2x32xf32>
    %c6_165 = arith.constant 6 : index
    %c0_166 = arith.constant 0 : index
    %402 = vector.load %arg11[%c6_165, %c0_166] : memref<16x128xf32, #tpu.memory_space<vmem>>, vector<2x128xf32>
    %cst_167 = arith.constant dense<0.000000e+00> : vector<2x128xf32>
    %403 = tpu.matmul %401, %291, %cst_167 {dimension_numbers = #tpu.dot_dimension_numbers<[1], [0], [0], [1], [0, 0, 1, 1], [], []>} : vector<2x32xf32>, vector<32x128xf32>, vector<2x128xf32> -> vector<2x128xf32>
    %404 = arith.addf %402, %403 : vector<2x128xf32>
    %405 = vector.extract_strided_slice %404 {offsets = [0, 0], sizes = [2, 32], strides = [1, 1]} : vector<2x128xf32> to vector<2x32xf32>
    %cst_168 = arith.constant 5.000000e-01 : f32
    %406 = vector.broadcast %cst_168 : f32 to vector<2x32xf32>
    %407 = arith.mulf %406, %405 : vector<2x32xf32>
    %408 = math.tanh %407 : vector<2x32xf32>
    %cst_169 = arith.constant 5.000000e-01 : f32
    %409 = vector.broadcast %cst_169 : f32 to vector<2x32xf32>
    %410 = arith.mulf %409, %408 : vector<2x32xf32>
    %cst_170 = arith.constant 5.000000e-01 : f32
    %411 = vector.broadcast %cst_170 : f32 to vector<2x32xf32>
    %412 = arith.addf %410, %411 : vector<2x32xf32>
    %413 = vector.extract_strided_slice %404 {offsets = [0, 32], sizes = [2, 32], strides = [1, 1]} : vector<2x128xf32> to vector<2x32xf32>
    %cst_171 = arith.constant 5.000000e-01 : f32
    %414 = vector.broadcast %cst_171 : f32 to vector<2x32xf32>
    %415 = arith.mulf %414, %413 : vector<2x32xf32>
    %416 = math.tanh %415 : vector<2x32xf32>
    %cst_172 = arith.constant 5.000000e-01 : f32
    %417 = vector.broadcast %cst_172 : f32 to vector<2x32xf32>
    %418 = arith.mulf %417, %416 : vector<2x32xf32>
    %cst_173 = arith.constant 5.000000e-01 : f32
    %419 = vector.broadcast %cst_173 : f32 to vector<2x32xf32>
    %420 = arith.addf %418, %419 : vector<2x32xf32>
    %421 = vector.extract_strided_slice %404 {offsets = [0, 64], sizes = [2, 32], strides = [1, 1]} : vector<2x128xf32> to vector<2x32xf32>
    %422 = math.tanh %421 : vector<2x32xf32>
    %423 = vector.extract_strided_slice %404 {offsets = [0, 96], sizes = [2, 32], strides = [1, 1]} : vector<2x128xf32> to vector<2x32xf32>
    %cst_174 = arith.constant 5.000000e-01 : f32
    %424 = vector.broadcast %cst_174 : f32 to vector<2x32xf32>
    %425 = arith.mulf %424, %423 : vector<2x32xf32>
    %426 = math.tanh %425 : vector<2x32xf32>
    %cst_175 = arith.constant 5.000000e-01 : f32
    %427 = vector.broadcast %cst_175 : f32 to vector<2x32xf32>
    %428 = arith.mulf %427, %426 : vector<2x32xf32>
    %cst_176 = arith.constant 5.000000e-01 : f32
    %429 = vector.broadcast %cst_176 : f32 to vector<2x32xf32>
    %430 = arith.addf %428, %429 : vector<2x32xf32>
    %431 = arith.mulf %420, %399 : vector<2x32xf32>
    %432 = arith.mulf %412, %422 : vector<2x32xf32>
    %433 = arith.addf %431, %432 : vector<2x32xf32>
    %434 = math.tanh %433 : vector<2x32xf32>
    %435 = arith.mulf %430, %434 : vector<2x32xf32>
    %c8_177 = arith.constant 8 : index
    %c0_178 = arith.constant 0 : index
    %436 = vector.load %arg11[%c8_177, %c0_178] : memref<16x128xf32, #tpu.memory_space<vmem>>, vector<2x128xf32>
    %cst_179 = arith.constant dense<0.000000e+00> : vector<2x128xf32>
    %437 = tpu.matmul %435, %291, %cst_179 {dimension_numbers = #tpu.dot_dimension_numbers<[1], [0], [0], [1], [0, 0, 1, 1], [], []>} : vector<2x32xf32>, vector<32x128xf32>, vector<2x128xf32> -> vector<2x128xf32>
    %438 = arith.addf %436, %437 : vector<2x128xf32>
    %439 = vector.extract_strided_slice %438 {offsets = [0, 0], sizes = [2, 32], strides = [1, 1]} : vector<2x128xf32> to vector<2x32xf32>
    %cst_180 = arith.constant 5.000000e-01 : f32
    %440 = vector.broadcast %cst_180 : f32 to vector<2x32xf32>
    %441 = arith.mulf %440, %439 : vector<2x32xf32>
    %442 = math.tanh %441 : vector<2x32xf32>
    %cst_181 = arith.constant 5.000000e-01 : f32
    %443 = vector.broadcast %cst_181 : f32 to vector<2x32xf32>
    %444 = arith.mulf %443, %442 : vector<2x32xf32>
    %cst_182 = arith.constant 5.000000e-01 : f32
    %445 = vector.broadcast %cst_182 : f32 to vector<2x32xf32>
    %446 = arith.addf %444, %445 : vector<2x32xf32>
    %447 = vector.extract_strided_slice %438 {offsets = [0, 32], sizes = [2, 32], strides = [1, 1]} : vector<2x128xf32> to vector<2x32xf32>
    %cst_183 = arith.constant 5.000000e-01 : f32
    %448 = vector.broadcast %cst_183 : f32 to vector<2x32xf32>
    %449 = arith.mulf %448, %447 : vector<2x32xf32>
    %450 = math.tanh %449 : vector<2x32xf32>
    %cst_184 = arith.constant 5.000000e-01 : f32
    %451 = vector.broadcast %cst_184 : f32 to vector<2x32xf32>
    %452 = arith.mulf %451, %450 : vector<2x32xf32>
    %cst_185 = arith.constant 5.000000e-01 : f32
    %453 = vector.broadcast %cst_185 : f32 to vector<2x32xf32>
    %454 = arith.addf %452, %453 : vector<2x32xf32>
    %455 = vector.extract_strided_slice %438 {offsets = [0, 64], sizes = [2, 32], strides = [1, 1]} : vector<2x128xf32> to vector<2x32xf32>
    %456 = math.tanh %455 : vector<2x32xf32>
    %457 = vector.extract_strided_slice %438 {offsets = [0, 96], sizes = [2, 32], strides = [1, 1]} : vector<2x128xf32> to vector<2x32xf32>
    %cst_186 = arith.constant 5.000000e-01 : f32
    %458 = vector.broadcast %cst_186 : f32 to vector<2x32xf32>
    %459 = arith.mulf %458, %457 : vector<2x32xf32>
    %460 = math.tanh %459 : vector<2x32xf32>
    %cst_187 = arith.constant 5.000000e-01 : f32
    %461 = vector.broadcast %cst_187 : f32 to vector<2x32xf32>
    %462 = arith.mulf %461, %460 : vector<2x32xf32>
    %cst_188 = arith.constant 5.000000e-01 : f32
    %463 = vector.broadcast %cst_188 : f32 to vector<2x32xf32>
    %464 = arith.addf %462, %463 : vector<2x32xf32>
    %465 = arith.mulf %454, %433 : vector<2x32xf32>
    %466 = arith.mulf %446, %456 : vector<2x32xf32>
    %467 = arith.addf %465, %466 : vector<2x32xf32>
    %468 = math.tanh %467 : vector<2x32xf32>
    %469 = arith.mulf %464, %468 : vector<2x32xf32>
    %c10_189 = arith.constant 10 : index
    %c0_190 = arith.constant 0 : index
    %470 = vector.load %arg11[%c10_189, %c0_190] : memref<16x128xf32, #tpu.memory_space<vmem>>, vector<2x128xf32>
    %cst_191 = arith.constant dense<0.000000e+00> : vector<2x128xf32>
    %471 = tpu.matmul %469, %291, %cst_191 {dimension_numbers = #tpu.dot_dimension_numbers<[1], [0], [0], [1], [0, 0, 1, 1], [], []>} : vector<2x32xf32>, vector<32x128xf32>, vector<2x128xf32> -> vector<2x128xf32>
    %472 = arith.addf %470, %471 : vector<2x128xf32>
    %473 = vector.extract_strided_slice %472 {offsets = [0, 0], sizes = [2, 32], strides = [1, 1]} : vector<2x128xf32> to vector<2x32xf32>
    %cst_192 = arith.constant 5.000000e-01 : f32
    %474 = vector.broadcast %cst_192 : f32 to vector<2x32xf32>
    %475 = arith.mulf %474, %473 : vector<2x32xf32>
    %476 = math.tanh %475 : vector<2x32xf32>
    %cst_193 = arith.constant 5.000000e-01 : f32
    %477 = vector.broadcast %cst_193 : f32 to vector<2x32xf32>
    %478 = arith.mulf %477, %476 : vector<2x32xf32>
    %cst_194 = arith.constant 5.000000e-01 : f32
    %479 = vector.broadcast %cst_194 : f32 to vector<2x32xf32>
    %480 = arith.addf %478, %479 : vector<2x32xf32>
    %481 = vector.extract_strided_slice %472 {offsets = [0, 32], sizes = [2, 32], strides = [1, 1]} : vector<2x128xf32> to vector<2x32xf32>
    %cst_195 = arith.constant 5.000000e-01 : f32
    %482 = vector.broadcast %cst_195 : f32 to vector<2x32xf32>
    %483 = arith.mulf %482, %481 : vector<2x32xf32>
    %484 = math.tanh %483 : vector<2x32xf32>
    %cst_196 = arith.constant 5.000000e-01 : f32
    %485 = vector.broadcast %cst_196 : f32 to vector<2x32xf32>
    %486 = arith.mulf %485, %484 : vector<2x32xf32>
    %cst_197 = arith.constant 5.000000e-01 : f32
    %487 = vector.broadcast %cst_197 : f32 to vector<2x32xf32>
    %488 = arith.addf %486, %487 : vector<2x32xf32>
    %489 = vector.extract_strided_slice %472 {offsets = [0, 64], sizes = [2, 32], strides = [1, 1]} : vector<2x128xf32> to vector<2x32xf32>
    %490 = math.tanh %489 : vector<2x32xf32>
    %491 = vector.extract_strided_slice %472 {offsets = [0, 96], sizes = [2, 32], strides = [1, 1]} : vector<2x128xf32> to vector<2x32xf32>
    %cst_198 = arith.constant 5.000000e-01 : f32
    %492 = vector.broadcast %cst_198 : f32 to vector<2x32xf32>
    %493 = arith.mulf %492, %491 : vector<2x32xf32>
    %494 = math.tanh %493 : vector<2x32xf32>
    %cst_199 = arith.constant 5.000000e-01 : f32
    %495 = vector.broadcast %cst_199 : f32 to vector<2x32xf32>
    %496 = arith.mulf %495, %494 : vector<2x32xf32>
    %cst_200 = arith.constant 5.000000e-01 : f32
    %497 = vector.broadcast %cst_200 : f32 to vector<2x32xf32>
    %498 = arith.addf %496, %497 : vector<2x32xf32>
    %499 = arith.mulf %488, %467 : vector<2x32xf32>
    %500 = arith.mulf %480, %490 : vector<2x32xf32>
    %501 = arith.addf %499, %500 : vector<2x32xf32>
    %502 = math.tanh %501 : vector<2x32xf32>
    %503 = arith.mulf %498, %502 : vector<2x32xf32>
    %c12_201 = arith.constant 12 : index
    %c0_202 = arith.constant 0 : index
    %504 = vector.load %arg11[%c12_201, %c0_202] : memref<16x128xf32, #tpu.memory_space<vmem>>, vector<2x128xf32>
    %cst_203 = arith.constant dense<0.000000e+00> : vector<2x128xf32>
    %505 = tpu.matmul %503, %291, %cst_203 {dimension_numbers = #tpu.dot_dimension_numbers<[1], [0], [0], [1], [0, 0, 1, 1], [], []>} : vector<2x32xf32>, vector<32x128xf32>, vector<2x128xf32> -> vector<2x128xf32>
    %506 = arith.addf %504, %505 : vector<2x128xf32>
    %507 = vector.extract_strided_slice %506 {offsets = [0, 0], sizes = [2, 32], strides = [1, 1]} : vector<2x128xf32> to vector<2x32xf32>
    %cst_204 = arith.constant 5.000000e-01 : f32
    %508 = vector.broadcast %cst_204 : f32 to vector<2x32xf32>
    %509 = arith.mulf %508, %507 : vector<2x32xf32>
    %510 = math.tanh %509 : vector<2x32xf32>
    %cst_205 = arith.constant 5.000000e-01 : f32
    %511 = vector.broadcast %cst_205 : f32 to vector<2x32xf32>
    %512 = arith.mulf %511, %510 : vector<2x32xf32>
    %cst_206 = arith.constant 5.000000e-01 : f32
    %513 = vector.broadcast %cst_206 : f32 to vector<2x32xf32>
    %514 = arith.addf %512, %513 : vector<2x32xf32>
    %515 = vector.extract_strided_slice %506 {offsets = [0, 32], sizes = [2, 32], strides = [1, 1]} : vector<2x128xf32> to vector<2x32xf32>
    %cst_207 = arith.constant 5.000000e-01 : f32
    %516 = vector.broadcast %cst_207 : f32 to vector<2x32xf32>
    %517 = arith.mulf %516, %515 : vector<2x32xf32>
    %518 = math.tanh %517 : vector<2x32xf32>
    %cst_208 = arith.constant 5.000000e-01 : f32
    %519 = vector.broadcast %cst_208 : f32 to vector<2x32xf32>
    %520 = arith.mulf %519, %518 : vector<2x32xf32>
    %cst_209 = arith.constant 5.000000e-01 : f32
    %521 = vector.broadcast %cst_209 : f32 to vector<2x32xf32>
    %522 = arith.addf %520, %521 : vector<2x32xf32>
    %523 = vector.extract_strided_slice %506 {offsets = [0, 64], sizes = [2, 32], strides = [1, 1]} : vector<2x128xf32> to vector<2x32xf32>
    %524 = math.tanh %523 : vector<2x32xf32>
    %525 = vector.extract_strided_slice %506 {offsets = [0, 96], sizes = [2, 32], strides = [1, 1]} : vector<2x128xf32> to vector<2x32xf32>
    %cst_210 = arith.constant 5.000000e-01 : f32
    %526 = vector.broadcast %cst_210 : f32 to vector<2x32xf32>
    %527 = arith.mulf %526, %525 : vector<2x32xf32>
    %528 = math.tanh %527 : vector<2x32xf32>
    %cst_211 = arith.constant 5.000000e-01 : f32
    %529 = vector.broadcast %cst_211 : f32 to vector<2x32xf32>
    %530 = arith.mulf %529, %528 : vector<2x32xf32>
    %cst_212 = arith.constant 5.000000e-01 : f32
    %531 = vector.broadcast %cst_212 : f32 to vector<2x32xf32>
    %532 = arith.addf %530, %531 : vector<2x32xf32>
    %533 = arith.mulf %522, %501 : vector<2x32xf32>
    %534 = arith.mulf %514, %524 : vector<2x32xf32>
    %535 = arith.addf %533, %534 : vector<2x32xf32>
    %536 = math.tanh %535 : vector<2x32xf32>
    %537 = arith.mulf %532, %536 : vector<2x32xf32>
    %c14_213 = arith.constant 14 : index
    %c0_214 = arith.constant 0 : index
    %538 = vector.load %arg11[%c14_213, %c0_214] : memref<16x128xf32, #tpu.memory_space<vmem>>, vector<2x128xf32>
    %cst_215 = arith.constant dense<0.000000e+00> : vector<2x128xf32>
    %539 = tpu.matmul %537, %291, %cst_215 {dimension_numbers = #tpu.dot_dimension_numbers<[1], [0], [0], [1], [0, 0, 1, 1], [], []>} : vector<2x32xf32>, vector<32x128xf32>, vector<2x128xf32> -> vector<2x128xf32>
    %540 = arith.addf %538, %539 : vector<2x128xf32>
    %541 = vector.extract_strided_slice %540 {offsets = [0, 0], sizes = [2, 32], strides = [1, 1]} : vector<2x128xf32> to vector<2x32xf32>
    %cst_216 = arith.constant 5.000000e-01 : f32
    %542 = vector.broadcast %cst_216 : f32 to vector<2x32xf32>
    %543 = arith.mulf %542, %541 : vector<2x32xf32>
    %544 = math.tanh %543 : vector<2x32xf32>
    %cst_217 = arith.constant 5.000000e-01 : f32
    %545 = vector.broadcast %cst_217 : f32 to vector<2x32xf32>
    %546 = arith.mulf %545, %544 : vector<2x32xf32>
    %cst_218 = arith.constant 5.000000e-01 : f32
    %547 = vector.broadcast %cst_218 : f32 to vector<2x32xf32>
    %548 = arith.addf %546, %547 : vector<2x32xf32>
    %549 = vector.extract_strided_slice %540 {offsets = [0, 32], sizes = [2, 32], strides = [1, 1]} : vector<2x128xf32> to vector<2x32xf32>
    %cst_219 = arith.constant 5.000000e-01 : f32
    %550 = vector.broadcast %cst_219 : f32 to vector<2x32xf32>
    %551 = arith.mulf %550, %549 : vector<2x32xf32>
    %552 = math.tanh %551 : vector<2x32xf32>
    %cst_220 = arith.constant 5.000000e-01 : f32
    %553 = vector.broadcast %cst_220 : f32 to vector<2x32xf32>
    %554 = arith.mulf %553, %552 : vector<2x32xf32>
    %cst_221 = arith.constant 5.000000e-01 : f32
    %555 = vector.broadcast %cst_221 : f32 to vector<2x32xf32>
    %556 = arith.addf %554, %555 : vector<2x32xf32>
    %557 = vector.extract_strided_slice %540 {offsets = [0, 64], sizes = [2, 32], strides = [1, 1]} : vector<2x128xf32> to vector<2x32xf32>
    %558 = math.tanh %557 : vector<2x32xf32>
    %559 = vector.extract_strided_slice %540 {offsets = [0, 96], sizes = [2, 32], strides = [1, 1]} : vector<2x128xf32> to vector<2x32xf32>
    %cst_222 = arith.constant 5.000000e-01 : f32
    %560 = vector.broadcast %cst_222 : f32 to vector<2x32xf32>
    %561 = arith.mulf %560, %559 : vector<2x32xf32>
    %562 = math.tanh %561 : vector<2x32xf32>
    %cst_223 = arith.constant 5.000000e-01 : f32
    %563 = vector.broadcast %cst_223 : f32 to vector<2x32xf32>
    %564 = arith.mulf %563, %562 : vector<2x32xf32>
    %cst_224 = arith.constant 5.000000e-01 : f32
    %565 = vector.broadcast %cst_224 : f32 to vector<2x32xf32>
    %566 = arith.addf %564, %565 : vector<2x32xf32>
    %567 = arith.mulf %556, %535 : vector<2x32xf32>
    %568 = arith.mulf %548, %558 : vector<2x32xf32>
    %569 = arith.addf %567, %568 : vector<2x32xf32>
    %570 = math.tanh %569 : vector<2x32xf32>
    %571 = arith.mulf %566, %570 : vector<2x32xf32>
    %c0_225 = arith.constant 0 : index
    %c0_226 = arith.constant 0 : index
    %572 = vector.load %arg8[%c0_225, %c0_226] : memref<32x4xf32, #tpu.memory_space<vmem>>, vector<32x4xf32>
    %cst_227 = arith.constant dense<0.000000e+00> : vector<2x4xf32>
    %573 = tpu.matmul %571, %572, %cst_227 {dimension_numbers = #tpu.dot_dimension_numbers<[1], [0], [0], [1], [0, 0, 1, 1], [], []>} : vector<2x32xf32>, vector<32x4xf32>, vector<2x4xf32> -> vector<2x4xf32>
    %c0_228 = arith.constant 0 : index
    %c0_229 = arith.constant 0 : index
    %574 = vector.load %arg9[%c0_228, %c0_229] : memref<1x4xf32, #tpu.memory_space<vmem>>, vector<1x4xf32>
    %575 = vector.broadcast %574 : vector<1x4xf32> to vector<2x4xf32>
    %576 = arith.addf %573, %575 : vector<2x4xf32>
    %c0_230 = arith.constant 0 : index
    %c0_231 = arith.constant 0 : index
    %577 = vector.load %arg10[%c0_230, %c0_231] : memref<2x4xf32, #tpu.memory_space<vmem>>, vector<2x4xf32>
    tpu.vector_store %arg10[%c0_230, %c0_231], %576 {strides = array<i32>} : memref<2x4xf32, #tpu.memory_space<vmem>>, vector<2x4xf32>,
    return
  }
  func.func @transform_0(%arg0: i32) -> (i32, i32) {
    %c0_i32 = arith.constant 0 : i32
    %c0_i32_0 = arith.constant 0 : i32
    %c0_i32_1 = arith.constant 0 : i32
    return %c0_i32, %c0_i32_0 : i32, i32
  }
  func.func @transform_1(%arg0: i32) -> (i32, i32) {
    %c0_i32 = arith.constant 0 : i32
    %c0_i32_0 = arith.constant 0 : i32
    %c0_i32_1 = arith.constant 0 : i32
    return %c0_i32, %c0_i32_0 : i32, i32
  }
  func.func @transform_2(%arg0: i32) -> (i32, i32) {
    %c0_i32 = arith.constant 0 : i32
    %c0_i32_0 = arith.constant 0 : i32
    %c0_i32_1 = arith.constant 0 : i32
    return %c0_i32, %c0_i32_0 : i32, i32
  }
  func.func @transform_3(%arg0: i32) -> (i32, i32) {
    %c0_i32 = arith.constant 0 : i32
    %c0_i32_0 = arith.constant 0 : i32
    %c0_i32_1 = arith.constant 0 : i32
    return %c0_i32, %c0_i32_0 : i32, i32
  }
  func.func @transform_4(%arg0: i32) -> (i32, i32) {
    %c0_i32 = arith.constant 0 : i32
    %c0_i32_0 = arith.constant 0 : i32
    %c0_i32_1 = arith.constant 0 : i32
    return %c0_i32, %c0_i32_0 : i32, i32
  }
  func.func @transform_5(%arg0: i32) -> (i32, i32) {
    %c0_i32 = arith.constant 0 : i32
    %c0_i32_0 = arith.constant 0 : i32
    %c0_i32_1 = arith.constant 0 : i32
    return %c0_i32, %c0_i32_0 : i32, i32
  }
  func.func @transform_6(%arg0: i32) -> (i32, i32) {
    %c0_i32 = arith.constant 0 : i32
    %c0_i32_0 = arith.constant 0 : i32
    %c0_i32_1 = arith.constant 0 : i32
    return %c0_i32, %c0_i32_0 : i32, i32
  }
  func.func @transform_7(%arg0: i32) -> (i32, i32) {
    %c0_i32 = arith.constant 0 : i32
    %c0_i32_0 = arith.constant 0 : i32
    %c0_i32_1 = arith.constant 0 : i32
    return %c0_i32, %c0_i32_0 : i32, i32
  }
  func.func @transform_8(%arg0: i32) -> (i32, i32) {
    %c0_i32 = arith.constant 0 : i32
    %c0_i32_0 = arith.constant 0 : i32
    %c0_i32_1 = arith.constant 0 : i32
    return %c0_i32, %c0_i32_0 : i32, i32
  }
  func.func @transform_9(%arg0: i32) -> (i32, i32) {
    %c0_i32 = arith.constant 0 : i32
    %c0_i32_0 = arith.constant 0 : i32
    %c0_i32_1 = arith.constant 0 : i32
    return %c0_i32, %c0_i32_0 : i32, i32
  }
}

</mosaic_0001>

<bundles_post_ra>
// kernel: lstm_model_forward.1
= control target key start
LH: loop header
LB: loop body
LE: loop exit
PB: predicated region body
PF: predicated region fallthrough
CT: control target
= control target key end

     0   :  { %14 = vsyncpa [#allocation5], 0  ;;  %s1515_s0 = inlined_call_operand.vmem [shape: f32[16,16], index: 0, kind: input, shape index: {}]   ;;  %s1516_s1 = inlined_call_operand.hbm [shape: f32[16,128], index: 1, kind: input, shape index: {}]   ;;  %s1517_s2 = inlined_call_operand.vmem [shape: f32[32,128], index: 2, kind: input, shape index: {}]   ;;  %s1518_s3 = inlined_call_operand.vmem [shape: f32[1,128], index: 3, kind: input, shape index: {}]   ;;  %s1519_s4 = inlined_call_operand.vmem [shape: f32[32,128], index: 4, kind: input, shape index: {}]   ;;  %s1520_s5 = inlined_call_operand.hbm [shape: f32[32,128], index: 5, kind: input, shape index: {}]   ;;  %s1521_s6 = inlined_call_operand.vmem [shape: f32[1,128], index: 6, kind: input, shape index: {}]   ;;  %s1522_s7 = inlined_call_operand.vmem [shape: f32[32,4], index: 7, kind: input, shape index: {}]   ;;  %s1523_s8 = inlined_call_operand.hbm [shape: f32[1,4], index: 8, kind: input, shape index: {}]   ;;  %s1524_s9 = inlined_call_operand.hbm [shape: f32[2,4], index: 9, kind: output, shape index: {}]  }
   0x1   :  { %15 = vsyncpa [#allocation8], 0 }
   0x2   :  { %16 = vsyncpa [#allocation6], 0  ;;  %s42_s11 = sshll.u32 %s1520_s5, 4  ;;  %s1247_s12 = smov [#allocation7]   ;;  %s43_s11 = int_to_ptr.hbm [resolvable:$true] %s42_s11 }
   0x3   :  { %s44_s13 = sshll.u32 %s1247_s12, 4  ;;  %s23_s16 = sshll.u32 %s1516_s1, 4  ;;  %s45_s13 = int_to_ptr.vmem [resolvable:$true] %s44_s13  ;;  %s24_s16 = int_to_ptr.hbm [resolvable:$true] %s23_s16 }
   0x4   :  { %s1248_s17 = smov 128   ;;  %s1249_s18 = smov 8  }
   0x5   :  { %50 = dma.hbm_to_vmem [thread:$0]  %s43_s11, 512, %s45_s13, [#allocation8], %s1248_s17, %s1248_s17, %s1249_s18  }
   0x6   :  { %s1250_s19 = smov [#allocation4]   ;;  %s60_s23 = sshll.u32 %s1523_s8, 4  ;;  %s61_s23 = int_to_ptr.hbm [resolvable:$true] %s60_s23 }
   0x7   :  { %s25_s20 = sshll.u32 %s1250_s19, 4  ;;  %s1251_s5 = smov [#allocation9]   ;;  %s26_s20 = int_to_ptr.vmem [resolvable:$true] %s25_s20 }
   0x8   :  { %31 = dma.hbm_to_vmem [thread:$0]  %s24_s16, 256, %s26_s20, [#allocation5], %s1248_s17, %s1248_s17, %s1249_s18  }
   0x9   :  { %s62_s24 = sshll.u32 %s1251_s5, 4  ;;  %s63_s24 = int_to_ptr.vmem [resolvable:$true] %s62_s24 }
   0xa   :  { %65 = dma.hbm_to_vmem [thread:$0]  %s61_s23, 16, %s63_s24, [#allocation8]  }
   0xb   :  { %1241 = dma.done.wait [#allocation5], 256  }
   0xc   :  { %1242 = vsyncadd [#allocation5], 4294967040 }
   0xd   :  { %1243 = dma.done.wait [#allocation8], 528  }
   0xe   :  { %1244 = vsyncadd [#allocation8], 4294966768  ;;  %v79_v0 = vld [vmem:[#allocation4 + $0x8] sm:$0xff]  ;;  %v78_v1 = vld [vmem:[#allocation4] sm:$0xff]  ;;  %vm90_vm0 = vcmask 130048   ;;  %v1252_v7 = vmov 0.0  }
   0xf   :  { %111 = vmatpush.msra.mxu0 %v79_v0  ;;  %v85_v2 = vld [vmem:[%s1515_s0] sm:$0xff]  ;;  %v83_v3 = vld [vmem:[%s1517_s2 + $0x18] sm:$0xff]  ;;  %v82_v4 = vld [vmem:[%s1517_s2 + $0x10] sm:$0xff]  ;;  %s1253_s13 = smov 64   ;;  %vm174_vm1 = vcmask 254976   ;;  %vm123_vm2 = vcmask 261120  }
  0x10   :  { %139 = vmatpush.msra.mxu1 %v83_v3  ;;  %191 = vmatpush.msra.mxu2 %v83_v3  ;;  %v81_v5 = vld [vmem:[%s1517_s2 + $0x8] sm:$0xff]  ;;  %v80_v6 = vld [vmem:[%s1517_s2] sm:$0xff]  ;;  %s1255_s28 = smov [#allocation10]   ;;  %s1007_s11 = sshll.u32 %s1524_s9, 4  ;;  %vm998_vm3 = vcmask 25600   ;;  %s1008_s11 = int_to_ptr.hbm [resolvable:$true] %s1007_s11 }
  0x11   :  { %112 = vmatpush.msra.mxu0 %v78_v1  ;;  %242 = vmatpush.msra.mxu3 %v83_v3  ;;  %v1335_v8 = vld [vmem:[%s1518_s3] ss:$0 sm:$0xff]  ;;  %s1254_s3 = smov 32   ;;  %s1005_s29 = sshll.u32 %s1255_s28, 4  ;;  %s1006_s29 = int_to_ptr.vmem [resolvable:$true] %s1005_s29 }
  0x12   :  { %1018 = vmatmul.msk.f32.vlgmr.msra.gmra.mxu0 %vm90_vm0, %v85_v2  ;;  %140 = vmatpush.msra.mxu1 %v82_v4 }
  0x13   :  { %192 = vmatpush.msra.mxu2 %v82_v4  ;;  %243 = vmatpush.msra.mxu3 %v82_v4 }
  0x14   :  { %141 = vmatpush.msra.mxu1 %v81_v5  ;;  %446 = vmatpush.msrb.mxu0 %v83_v3 }
  0x15   :  { %193 = vmatpush.msra.mxu2 %v81_v5  ;;  %244 = vmatpush.msra.mxu3 %v81_v5 }
  0x16   :  { %142 = vmatpush.msra.mxu1 %v80_v6  ;;  %447 = vmatpush.msrb.mxu0 %v82_v4 }
  0x17   :  { %143 = vmatmul.f32.vlgmr.msra.gmra.mxu1 %v1252_v7  ;;  %194 = vmatpush.msra.mxu2 %v80_v6 }
  0x18   :  { %245 = vmatpush.msra.mxu3 %v80_v6  ;;  %293 = vmatpush.msrb.mxu1 %v83_v3 }
  0x19   :  { %344 = vmatpush.msrb.mxu2 %v83_v3  ;;  %448 = vmatpush.msrb.mxu0 %v81_v5 }
  0x1a   :  { %395 = vmatpush.msrb.mxu3 %v83_v3  ;;  %294 = vmatpush.msrb.mxu1 %v82_v4 }
  0x1b   :  { %345 = vmatpush.msrb.mxu2 %v82_v4  ;;  %449 = vmatpush.msrb.mxu0 %v80_v6 }
  0x1c   :  { %396 = vmatpush.msrb.mxu3 %v82_v4  ;;  %295 = vmatpush.msrb.mxu1 %v81_v5 }
  0x1d   :  { %346 = vmatpush.msrb.mxu2 %v81_v5 }
  0x1e   :  { %397 = vmatpush.msrb.mxu3 %v81_v5  ;;  %296 = vmatpush.msrb.mxu1 %v80_v6 }
  0x1f   :  { %347 = vmatpush.msrb.mxu2 %v80_v6 }
  0x20   :  { %398 = vmatpush.msrb.mxu3 %v80_v6  ;;  %497 = vmatpush.msra.mxu1 %v83_v3 }
  0x22   :  { %498 = vmatpush.msra.mxu1 %v82_v4 }
  0x24   :  { %499 = vmatpush.msra.mxu1 %v81_v5 }
  0x26   :  { %500 = vmatpush.msra.mxu1 %v80_v6 }
  0x8f   :  { %v114_v9 = vpop.f32.mrf.mxu0 }
  0x90   :  { %v115_v10 = vadd.f32 %v1335_v8, %v114_v9 }
  0x92   :  { %120 = vst [vmem:[#allocation2] sm:$0xff] %v115_v10 }
  0x94   :  { %v144_v11 = vpop.f32.mrf.mxu1 }
  0x99   :  { %v122_v12 = vld [vmem:[#allocation2] sm:$0x3]  ;;  %v176_v28 = vld [vmem:[#allocation2 + $0x2] sm:$0x3]  ;;  %v227_v45 = vld [vmem:[#allocation2 + $0x4] sm:$0x3] }
  0x9a   :  { %v147_v13 = vadd.f32 %v144_v11, %v122_v12  ;;  %v278_v62 = vld [vmem:[#allocation2 + $0x6] sm:$0x3] }
  0x9c   :  { %1049 = vtanh.f32 %v147_v13  ;;  %v148_v15 = vmul.f32 0.5, %v147_v13 }
  0x9e   :  { %1051 = vtanh.f32 %v148_v15 }
  0xa2   :  { %v1050_v14 = vpop.eup %1049 }
  0xa3   :  { %155 = vrot.lane.b32.xlu0 %v1050_v14, %s1253_s13  ;;  %v86_v14 = vld [vmem:[%s1515_s0 + $0x8] sm:$0xff] }
  0xa4   :  { %v1052_v16 = vpop.eup %1051  ;;  %1019 = vmatmul.msk.f32.gmra.mxu0 %vm90_vm0, %v86_v14 }
  0xa5   :  { %v150_v17 = vmul.f32 0.5, %v1052_v16 }
  0xa7   :  { %v151_v18 = vadd.f32 0.5, %v150_v17  ;;  %v536_v17 = vld [vmem:[%s1519_s4 + $0x18] sm:$0xff] }
  0xa9   :  { %v153_v21 = vmul.f32 0.0, %v151_v18 }
 0x115   :  { %v156_v19 = vpop.permute.xlu0 %155 }
 0x116   :  { %v158_v20 = vmul.f32 %v156_v19, %v151_v18  ;;  %v534_v19 = vld [vmem:[%s1519_s4 + $0x8] sm:$0xff] }
 0x118   :  { %160 = vrot.lane.b32.xlu0 %v158_v20, %s1254_s3  ;;  %v533_v20 = vld [vmem:[%s1519_s4] sm:$0xff] }
 0x18a   :  { %v161_v22 = vpop.permute.xlu0 %160 }
 0x18b   :  { %v163_v23 = vadd.f32 %v161_v22, %v153_v21  ;;  %v117_v21 = vpop.f32.mrf.mxu0 }
 0x18c   :  { %v118_v22 = vadd.f32 %v1335_v8, %v117_v21 }
 0x18d   :  { %1053 = vtanh.f32 %v163_v23 }
 0x18e   :  { %121 = vst [vmem:[#allocation2 + $0x8] sm:$0xff] %v118_v22 }
 0x193   :  { %v1054_v24 = vpop.eup %1053 }
 0x194   :  { %166 = vrot.lane.b32.xlu1 %v1054_v24, %s1253_s13 }
 0x206   :  { %v167_v25 = vpop.permute.xlu1 %166 }
 0x207   :  { %v169_v26 = vmul.f32 %v167_v25, %v151_v18  ;;  %v535_v18 = vld [vmem:[%s1519_s4 + $0x10] sm:$0xff]  ;;  %v329_v25 = vld [vmem:[#allocation2 + $0x8] sm:$0x3] }
 0x209   :  { %171 = vrot.lane.b32.xlu1 %v169_v26, %s1254_s3 }
 0x27b   :  { %v172_v27 = vpop.permute.xlu1 %171 }
 0x27c   :  { %175 = vst.msk [vmem:[#allocation3] sm:$0x3] %vm174_vm1, %v172_v27  ;;  %1020 = vmatmul.msk.f32.vlgmr.msra.gmra.mxu2 %vm123_vm2, %v172_v27 }
 0x27d   :  { %565 = vmatpush.msra.mxu2 %v536_v17 }
 0x27f   :  { %566 = vmatpush.msra.mxu2 %v535_v18 }
 0x281   :  { %567 = vmatpush.msra.mxu2 %v534_v19  ;;  %v431_v19 = vld [vmem:[#allocation2 + $0xc] sm:$0x3] }
 0x283   :  { %568 = vmatpush.msra.mxu2 %v533_v20 }
 0x2ff   :  { %v196_v29 = vpop.f32.mrf.mxu2 }
 0x300   :  { %v199_v30 = vadd.f32 %v196_v29, %v176_v28  ;;  %v1383_v28 = vld [vmem:[%s1521_s6] ss:$0 sm:$0xff] }
 0x302   :  { %1055 = vtanh.f32 %v199_v30  ;;  %v200_v32 = vmul.f32 0.5, %v199_v30 }
 0x304   :  { %1057 = vtanh.f32 %v200_v32 }
 0x308   :  { %v1056_v31 = vpop.eup %1055 }
 0x309   :  { %207 = vrot.lane.b32.xlu2 %v1056_v31, %s1253_s13 }
 0x30a   :  { %v1058_v33 = vpop.eup %1057 }
 0x30b   :  { %v202_v34 = vmul.f32 0.5, %v1058_v33 }
 0x30d   :  { %v203_v35 = vadd.f32 0.5, %v202_v34 }
 0x30f   :  { %v205_v38 = vmul.f32 %v203_v35, %v163_v23 }
 0x363   :  { %v208_v36 = vpop.permute.xlu2 %207 }
 0x364   :  { %v210_v37 = vmul.f32 %v208_v36, %v203_v35 }
 0x366   :  { %212 = vrot.lane.b32.xlu2 %v210_v37, %s1254_s3 }
 0x3c0   :  { %v213_v39 = vpop.permute.xlu2 %212 }
 0x3c1   :  { %v215_v40 = vadd.f32 %v213_v39, %v205_v38 }
 0x3c3   :  { %1059 = vtanh.f32 %v215_v40 }
 0x3c9   :  { %v1060_v41 = vpop.eup %1059 }
 0x3ca   :  { %218 = vrot.lane.b32.xlu0 %v1060_v41, %s1253_s13 }
 0x43c   :  { %v219_v42 = vpop.permute.xlu0 %218 }
 0x43d   :  { %v221_v43 = vmul.f32 %v219_v42, %v203_v35 }
 0x43f   :  { %223 = vrot.lane.b32.xlu1 %v221_v43, %s1254_s3  ;;  %v1393_v43 = vld [vmem:[#allocation7 + $0x18] sm:$0xff] }
 0x440   :  { %640 = vmatpush.msra.mxu0 %v1393_v43 }
 0x4b1   :  { %v224_v44 = vpop.permute.xlu1 %223 }
 0x4b2   :  { %226 = vst.msk [vmem:[#allocation3 + $0x2] sm:$0x3] %vm174_vm1, %v224_v44  ;;  %1021 = vmatmul.msk.f32.vlgmr.msra.gmra.mxu3 %vm123_vm2, %v224_v44  ;;  %v1395_v44 = vld [vmem:[#allocation7 + $0x10] sm:$0xff] }
 0x4b3   :  { %591 = vmatpush.msra.mxu3 %v1393_v43  ;;  %641 = vmatpush.msra.mxu0 %v1395_v44 }
 0x4b5   :  { %592 = vmatpush.msra.mxu3 %v1395_v44 }
 0x535   :  { %v247_v46 = vpop.f32.mrf.mxu3 }
 0x536   :  { %v250_v47 = vadd.f32 %v247_v46, %v227_v45  ;;  %v1399_v45 = vld [vmem:[#allocation7 + $0x8] sm:$0xff]  ;;  %v1405_v46 = vld [vmem:[#allocation7] sm:$0xff] }
 0x537   :  { %593 = vmatpush.msra.mxu3 %v1399_v45  ;;  %642 = vmatpush.msra.mxu0 %v1399_v45 }
 0x538   :  { %1061 = vtanh.f32 %v250_v47  ;;  %v251_v49 = vmul.f32 0.5, %v250_v47 }
 0x539   :  { %594 = vmatpush.msra.mxu3 %v1405_v46  ;;  %643 = vmatpush.msra.mxu0 %v1405_v46 }
 0x53a   :  { %1063 = vtanh.f32 %v251_v49 }
 0x53e   :  { %v1062_v48 = vpop.eup %1061 }
 0x53f   :  { %258 = vrot.lane.b32.xlu2 %v1062_v48, %s1253_s13  ;;  %v380_v48 = vld [vmem:[#allocation2 + $0xa] sm:$0x3] }
 0x540   :  { %v1064_v50 = vpop.eup %1063 }
 0x541   :  { %v253_v51 = vmul.f32 0.5, %v1064_v50 }
 0x543   :  { %v254_v52 = vadd.f32 0.5, %v253_v51 }
 0x545   :  { %v256_v55 = vmul.f32 %v254_v52, %v215_v40 }
 0x599   :  { %v259_v53 = vpop.permute.xlu2 %258 }
 0x59a   :  { %v261_v54 = vmul.f32 %v259_v53, %v254_v52 }
 0x59c   :  { %263 = vrot.lane.b32.xlu0 %v261_v54, %s1254_s3 }
 0x60e   :  { %v264_v56 = vpop.permute.xlu0 %263 }
 0x60f   :  { %v266_v57 = vadd.f32 %v264_v56, %v256_v55 }
 0x611   :  { %1065 = vtanh.f32 %v266_v57 }
 0x617   :  { %v1066_v58 = vpop.eup %1065 }
 0x618   :  { %269 = vrot.lane.b32.xlu1 %v1066_v58, %s1253_s13 }
 0x68a   :  { %v270_v59 = vpop.permute.xlu1 %269 }
 0x68b   :  { %v272_v60 = vmul.f32 %v270_v59, %v254_v52 }
 0x68d   :  { %274 = vrot.lane.b32.xlu2 %v272_v60, %s1254_s3 }
 0x6e7   :  { %v275_v61 = vpop.permute.xlu2 %274 }
 0x6e8   :  { %277 = vst.msk [vmem:[#allocation3 + $0x4] sm:$0x3] %vm174_vm1, %v275_v61  ;;  %1022 = vmatmul.msk.f32.vlgmr.msrb.gmra.mxu1 %vm123_vm2, %v275_v61 }
 0x6e9   :  { %689 = vmatpush.msrb.mxu1 %v1393_v43 }
 0x6eb   :  { %690 = vmatpush.msrb.mxu1 %v1395_v44 }
 0x6ed   :  { %691 = vmatpush.msrb.mxu1 %v1399_v45 }
 0x6ef   :  { %692 = vmatpush.msrb.mxu1 %v1405_v46 }
 0x765   :  { %v298_v63 = vpop.f32.mrf.mxu1 }
 0x766   :  { %v301_v0 = vadd.f32 %v298_v63, %v278_v62 }
 0x768   :  { %1067 = vtanh.f32 %v301_v0  ;;  %v302_v2 = vmul.f32 0.5, %v301_v0 }
 0x76a   :  { %1069 = vtanh.f32 %v302_v2 }
 0x76e   :  { %v1068_v1 = vpop.eup %1067 }
 0x76f   :  { %309 = vrot.lane.b32.xlu0 %v1068_v1, %s1253_s13 }
 0x770   :  { %v1070_v3 = vpop.eup %1069 }
 0x771   :  { %v304_v4 = vmul.f32 0.5, %v1070_v3 }
 0x773   :  { %v305_v5 = vadd.f32 0.5, %v304_v4 }
 0x775   :  { %v307_v10 = vmul.f32 %v305_v5, %v266_v57 }
 0x7e1   :  { %v310_v6 = vpop.permute.xlu0 %309 }
 0x7e2   :  { %v312_v9 = vmul.f32 %v310_v6, %v305_v5 }
 0x7e4   :  { %314 = vrot.lane.b32.xlu1 %v312_v9, %s1254_s3 }
 0x856   :  { %v315_v11 = vpop.permute.xlu1 %314 }
 0x857   :  { %v317_v12 = vadd.f32 %v315_v11, %v307_v10 }
 0x859   :  { %1071 = vtanh.f32 %v317_v12 }
 0x85f   :  { %v1072_v13 = vpop.eup %1071 }
 0x860   :  { %320 = vrot.lane.b32.xlu2 %v1072_v13, %s1253_s13 }
 0x8ba   :  { %v321_v15 = vpop.permute.xlu2 %320 }
 0x8bb   :  { %v323_v16 = vmul.f32 %v321_v15, %v305_v5 }
 0x8bd   :  { %325 = vrot.lane.b32.xlu0 %v323_v16, %s1254_s3 }
 0x92f   :  { %v326_v23 = vpop.permute.xlu0 %325 }
 0x930   :  { %328 = vst.msk [vmem:[#allocation3 + $0x6] sm:$0x3] %vm174_vm1, %v326_v23  ;;  %1023 = vmatmul.msk.f32.vlgmr.msrb.gmra.mxu2 %vm123_vm2, %v326_v23 }
 0x931   :  { %885 = vmatpush.msrb.mxu2 %v1393_v43 }
 0x933   :  { %886 = vmatpush.msrb.mxu2 %v1395_v44 }
 0x935   :  { %887 = vmatpush.msrb.mxu2 %v1399_v45 }
 0x937   :  { %v542_v24 = vld [vmem:[#allocation3] sm:$0xff]  ;;  %888 = vmatpush.msrb.mxu2 %v1405_v46 }
 0x938   :  { %1027 = vmatmul.msk.f32.vlgmr.msra.gmra.mxu2 %vm123_vm2, %v542_v24 }
 0x9b3   :  { %v349_v26 = vpop.f32.mrf.mxu2 }
 0x9b4   :  { %v352_v27 = vadd.f32 %v349_v26, %v329_v25 }
 0x9b6   :  { %1073 = vtanh.f32 %v352_v27  ;;  %v353_v31 = vmul.f32 0.5, %v352_v27 }
 0x9b8   :  { %1075 = vtanh.f32 %v353_v31 }
 0x9bb   :  { %v570_v29 = vpop.f32.mrf.mxu2 }
 0x9bc   :  { %v1074_v8 = vpop.eup %1073  ;;  %v571_v30 = vadd.f32 %v1383_v28, %v570_v29 }
 0x9bd   :  { %360 = vrot.lane.b32.xlu1 %v1074_v8, %s1253_s13 }
 0x9be   :  { %576 = vst [vmem:[#allocation2] sm:$0xff] %v571_v30  ;;  %v1076_v32 = vpop.eup %1075 }
 0x9bf   :  { %v355_v33 = vmul.f32 0.5, %v1076_v32 }
 0x9c1   :  { %v356_v34 = vadd.f32 0.5, %v355_v33 }
 0x9c3   :  { %v358_v37 = vmul.f32 %v356_v34, %v317_v12 }
 0x9c5   :  { %v578_v51 = vld [vmem:[#allocation2] sm:$0x3]  ;;  %v622_v23 = vld [vmem:[#allocation2 + $0x2] sm:$0x3] }
 0xa2f   :  { %v361_v35 = vpop.permute.xlu1 %360 }
 0xa30   :  { %v363_v36 = vmul.f32 %v361_v35, %v356_v34 }
 0xa32   :  { %365 = vrot.lane.b32.xlu2 %v363_v36, %s1254_s3 }
 0xa8c   :  { %v366_v38 = vpop.permute.xlu2 %365 }
 0xa8d   :  { %v1388_v39 = vadd.f32 %v366_v38, %v358_v37 }
 0xa8f   :  { %1077 = vtanh.f32 %v1388_v39 }
 0xa95   :  { %v1078_v40 = vpop.eup %1077 }
 0xa96   :  { %371 = vrot.lane.b32.xlu0 %v1078_v40, %s1253_s13 }
 0xb08   :  { %v372_v41 = vpop.permute.xlu0 %371 }
 0xb09   :  { %v374_v42 = vmul.f32 %v372_v41, %v356_v34 }
 0xb0b   :  { %376 = vrot.lane.b32.xlu1 %v374_v42, %s1254_s3 }
 0xb7d   :  { %v377_v47 = vpop.permute.xlu1 %376 }
 0xb7e   :  { %379 = vst.msk [vmem:[#allocation3 + $0x8] sm:$0x3] %vm174_vm1, %v377_v47  ;;  %1024 = vmatmul.msk.f32.vlgmr.msrb.gmra.mxu3 %vm123_vm2, %v377_v47 }
 0xb7f   :  { %738 = vmatpush.msrb.mxu3 %v1393_v43 }
 0xb81   :  { %739 = vmatpush.msrb.mxu3 %v1395_v44 }
 0xb83   :  { %740 = vmatpush.msrb.mxu3 %v1399_v45 }
 0xb85   :  { %741 = vmatpush.msrb.mxu3 %v1405_v46 }
 0xb86   :  { %595 = vmatmul.f32.vlgmr.msra.gmra.mxu3 %v1252_v7 }
 0xb87   :  { %934 = vmatpush.msra.mxu3 %v1393_v43 }
 0xb89   :  { %935 = vmatpush.msra.mxu3 %v1395_v44 }
 0xb8b   :  { %936 = vmatpush.msra.mxu3 %v1399_v45 }
 0xb8d   :  { %937 = vmatpush.msra.mxu3 %v1405_v46 }
 0xc01   :  { %v400_v49 = vpop.f32.mrf.mxu3 }
 0xc02   :  { %v403_v50 = vadd.f32 %v400_v49, %v380_v48 }
 0xc04   :  { %1079 = vtanh.f32 %v403_v50  ;;  %v404_v55 = vmul.f32 0.5, %v403_v50 }
 0xc09   :  { %v596_v52 = vpop.f32.mrf.mxu3 }
 0xc0a   :  { %v1080_v53 = vpop.eup %1079  ;;  %v599_v54 = vadd.f32 %v596_v52, %v578_v51 }
 0xc0b   :  { %411 = vrot.lane.b32.xlu2 %v1080_v53, %s1253_s13 }
 0xc0c   :  { %1081 = vtanh.f32 %v599_v54  ;;  %v600_v61 = vmul.f32 0.5, %v599_v54 }
 0xc0d   :  { %1083 = vtanh.f32 %v404_v55 }
 0xc0e   :  { %1085 = vtanh.f32 %v600_v61 }
 0xc12   :  { %v1082_v7 = vpop.eup %1081 }
 0xc13   :  { %607 = vrot.lane.b32.xlu0 %v1082_v7, %s1253_s13  ;;  %v1084_v56 = vpop.eup %1083 }
 0xc14   :  { %v406_v57 = vmul.f32 0.5, %v1084_v56  ;;  %v1086_v62 = vpop.eup %1085 }
 0xc15   :  { %v602_v63 = vmul.f32 0.5, %v1086_v62 }
 0xc16   :  { %v407_v58 = vadd.f32 0.5, %v406_v57  ;;  %v671_v57 = vld [vmem:[#allocation2 + $0x4] sm:$0x3] }
 0xc17   :  { %v603_v0 = vadd.f32 0.5, %v602_v63 }
 0xc18   :  { %v409_v3 = vmul.f32 %v407_v58, %v1388_v39 }
 0xc19   :  { %v605_v6 = vmul.f32 0.0, %v603_v0 }
 0xc65   :  { %v412_v59 = vpop.permute.xlu2 %411 }
 0xc66   :  { %v414_v60 = vmul.f32 %v412_v59, %v407_v58 }
 0xc68   :  { %416 = vrot.lane.b32.xlu1 %v414_v60, %s1254_s3 }
 0xc85   :  { %v608_v1 = vpop.permute.xlu0 %607 }
 0xc86   :  { %v610_v2 = vmul.f32 %v608_v1, %v603_v0 }
 0xc88   :  { %612 = vrot.lane.b32.xlu2 %v610_v2, %s1254_s3 }
 0xcda   :  { %v417_v4 = vpop.permute.xlu1 %416 }
 0xcdb   :  { %v419_v5 = vadd.f32 %v417_v4, %v409_v3 }
 0xcdd   :  { %1087 = vtanh.f32 %v419_v5 }
 0xce2   :  { %v613_v9 = vpop.permute.xlu2 %612 }
 0xce3   :  { %v1088_v10 = vpop.eup %1087  ;;  %v615_v11 = vadd.f32 %v613_v9, %v605_v6 }
 0xce4   :  { %422 = vrot.lane.b32.xlu0 %v1088_v10, %s1253_s13 }
 0xce5   :  { %1089 = vtanh.f32 %v615_v11 }
 0xceb   :  { %v1090_v12 = vpop.eup %1089 }
 0xcec   :  { %618 = vrot.lane.b32.xlu1 %v1090_v12, %s1253_s13 }
 0xd56   :  { %v423_v13 = vpop.permute.xlu0 %422 }
 0xd57   :  { %v425_v14 = vmul.f32 %v423_v13, %v407_v58 }
 0xd59   :  { %427 = vrot.lane.b32.xlu2 %v425_v14, %s1254_s3 }
 0xd5e   :  { %v619_v15 = vpop.permute.xlu1 %618 }
 0xd5f   :  { %v621_v16 = vmul.f32 %v619_v15, %v603_v0 }
 0xd61   :  { %624 = vrot.lane.b32.xlu0 %v621_v16, %s1254_s3 }
 0xdb3   :  { %v428_v17 = vpop.permute.xlu2 %427 }
 0xdb4   :  { %430 = vst.msk [vmem:[#allocation3 + $0xa] sm:$0x3] %vm174_vm1, %v428_v17  ;;  %1025 = vmatmul.msk.f32.vlgmr.msrb.gmra.mxu0 %vm123_vm2, %v428_v17  ;;  %v720_v17 = vld [vmem:[#allocation2 + $0x6] sm:$0x3] }
 0xdb5   :  { %787 = vmatpush.msrb.mxu0 %v1393_v43 }
 0xdb7   :  { %788 = vmatpush.msrb.mxu0 %v1395_v44 }
 0xdb9   :  { %789 = vmatpush.msrb.mxu0 %v1399_v45 }
 0xdbb   :  { %790 = vmatpush.msrb.mxu0 %v1405_v46 }
 0xdd3   :  { %v625_v18 = vpop.permute.xlu0 %624 }
 0xdd4   :  { %1029 = vmatmul.msk.f32.vlgmr.msra.gmra.mxu0 %vm123_vm2, %v625_v18 }
 0xe31   :  { %v451_v20 = vpop.f32.mrf.mxu0 }
 0xe32   :  { %v454_v21 = vadd.f32 %v451_v20, %v431_v19 }
 0xe34   :  { %1091 = vtanh.f32 %v454_v21  ;;  %v455_v27 = vmul.f32 0.5, %v454_v21 }
 0xe3a   :  { %v1092_v22 = vpop.eup %1091 }
 0xe3b   :  { %462 = vrot.lane.b32.xlu1 %v1092_v22, %s1253_s13 }
 0xe51   :  { %v645_v24 = vpop.f32.mrf.mxu0 }
 0xe52   :  { %v648_v25 = vadd.f32 %v645_v24, %v622_v23 }
 0xe54   :  { %1093 = vtanh.f32 %v648_v25  ;;  %v649_v29 = vmul.f32 0.5, %v648_v25 }
 0xe55   :  { %1095 = vtanh.f32 %v455_v27 }
 0xe56   :  { %1097 = vtanh.f32 %v649_v29 }
 0xe5a   :  { %v1094_v26 = vpop.eup %1093 }
 0xe5b   :  { %656 = vrot.lane.b32.xlu2 %v1094_v26, %s1253_s13  ;;  %v1096_v8 = vpop.eup %1095 }
 0xe5c   :  { %v457_v30 = vmul.f32 0.5, %v1096_v8  ;;  %v1098_v32 = vpop.eup %1097 }
 0xe5d   :  { %v651_v35 = vmul.f32 0.5, %v1098_v32 }
 0xe5e   :  { %v458_v31 = vadd.f32 0.5, %v457_v30 }
 0xe5f   :  { %v652_v36 = vadd.f32 0.5, %v651_v35 }
 0xe60   :  { %v460_v39 = vmul.f32 %v458_v31, %v419_v5 }
 0xe61   :  { %v654_v42 = vmul.f32 %v652_v36, %v615_v11 }
 0xead   :  { %v463_v33 = vpop.permute.xlu1 %462 }
 0xeae   :  { %v465_v34 = vmul.f32 %v463_v33, %v458_v31 }
 0xeb0   :  { %467 = vrot.lane.b32.xlu0 %v465_v34, %s1254_s3 }
 0xeb5   :  { %v657_v37 = vpop.permute.xlu2 %656 }
 0xeb6   :  { %v659_v38 = vmul.f32 %v657_v37, %v652_v36 }
 0xeb8   :  { %661 = vrot.lane.b32.xlu1 %v659_v38, %s1254_s3 }
 0xf22   :  { %v468_v40 = vpop.permute.xlu0 %467 }
 0xf23   :  { %v1448_v41 = vadd.f32 %v468_v40, %v460_v39 }
 0xf25   :  { %1099 = vtanh.f32 %v1448_v41 }
 0xf2a   :  { %v662_v47 = vpop.permute.xlu1 %661 }
 0xf2b   :  { %v1100_v48 = vpop.eup %1099  ;;  %v664_v49 = vadd.f32 %v662_v47, %v654_v42 }
 0xf2c   :  { %473 = vrot.lane.b32.xlu2 %v1100_v48, %s1253_s13 }
 0xf2d   :  { %1101 = vtanh.f32 %v664_v49 }
 0xf33   :  { %v1102_v50 = vpop.eup %1101 }
 0xf34   :  { %667 = vrot.lane.b32.xlu0 %v1102_v50, %s1253_s13 }
 0xf86   :  { %v474_v51 = vpop.permute.xlu2 %473 }
 0xf87   :  { %v476_v52 = vmul.f32 %v474_v51, %v458_v31 }
 0xf89   :  { %478 = vrot.lane.b32.xlu1 %v476_v52, %s1254_s3 }
 0xfa6   :  { %v668_v53 = vpop.permute.xlu0 %667 }
 0xfa7   :  { %v670_v54 = vmul.f32 %v668_v53, %v652_v36 }
 0xfa9   :  { %673 = vrot.lane.b32.xlu2 %v670_v54, %s1254_s3 }
 0xffb   :  { %v479_v7 = vpop.permute.xlu1 %478 }
 0xffc   :  { %481 = vst.msk [vmem:[#allocation3 + $0xc] sm:$0x3] %vm174_vm1, %v479_v7  ;;  %1026 = vmatmul.msk.f32.vlgmr.msra.gmra.mxu1 %vm123_vm2, %v479_v7 }
 0xffd   :  { %836 = vmatpush.msra.mxu1 %v1393_v43 }
 0xfff   :  { %837 = vmatpush.msra.mxu1 %v1395_v44  ;;  %v482_v44 = vld [vmem:[#allocation2 + $0xe] sm:$0x3] }
0x1001   :  { %838 = vmatpush.msra.mxu1 %v1399_v45 }
0x1003   :  { %v674_v55 = vpop.permute.xlu2 %673  ;;  %839 = vmatpush.msra.mxu1 %v1405_v46 }
0x1004   :  { %1030 = vmatmul.msk.f32.vlgmr.msrb.gmra.mxu1 %vm123_vm2, %v674_v55 }
0x1079   :  { %v502_v56 = vpop.f32.mrf.mxu1 }
0x107a   :  { %v505_v45 = vadd.f32 %v502_v56, %v482_v44 }
0x107c   :  { %v506_v6 = vmul.f32 0.5, %v505_v45 }
0x1081   :  { %v694_v58 = vpop.f32.mrf.mxu1 }
0x1082   :  { %v697_v59 = vadd.f32 %v694_v58, %v671_v57 }
0x1084   :  { %1103 = vtanh.f32 %v697_v59  ;;  %v698_v61 = vmul.f32 0.5, %v697_v59 }
0x1086   :  { %1105 = vtanh.f32 %v698_v61 }
0x1087   :  { %1107 = vtanh.f32 %v505_v45 }
0x108a   :  { %v1104_v60 = vpop.eup %1103 }
0x108b   :  { %705 = vrot.lane.b32.xlu0 %v1104_v60, %s1253_s13 }
0x108c   :  { %v1106_v43 = vpop.eup %1105 }
0x108d   :  { %v700_v62 = vmul.f32 0.5, %v1106_v43  ;;  %v1108_v46 = vpop.eup %1107 }
0x108f   :  { %v701_v63 = vadd.f32 0.5, %v700_v62 }
0x1091   :  { %v703_v2 = vmul.f32 %v701_v63, %v664_v49 }
0x10fd   :  { %v706_v0 = vpop.permute.xlu0 %705 }
0x10fe   :  { %v708_v1 = vmul.f32 %v706_v0, %v701_v63 }
0x1100   :  { %710 = vrot.lane.b32.xlu1 %v708_v1, %s1254_s3 }
0x1108   :  { %513 = vrot.lane.b32.xlu1 %v1108_v46, %s1253_s13 }
0x1172   :  { %v711_v3 = vpop.permute.xlu1 %710 }
0x1173   :  { %v713_v4 = vadd.f32 %v711_v3, %v703_v2 }
0x1175   :  { %1109 = vtanh.f32 %v713_v4 }
0x1176   :  { %1111 = vtanh.f32 %v506_v6 }
0x117a   :  { %v514_v13 = vpop.permute.xlu1 %513 }
0x117b   :  { %v1110_v5 = vpop.eup %1109 }
0x117c   :  { %716 = vrot.lane.b32.xlu2 %v1110_v5, %s1253_s13  ;;  %v1112_v9 = vpop.eup %1111 }
0x117d   :  { %v508_v12 = vmul.f32 0.5, %v1112_v9 }
0x117f   :  { %v509_v14 = vadd.f32 0.5, %v508_v12 }
0x1181   :  { %v516_v15 = vmul.f32 %v514_v13, %v509_v14  ;;  %v511_v21 = vmul.f32 %v509_v14, %v1448_v41 }
0x11d6   :  { %v717_v10 = vpop.permute.xlu2 %716 }
0x11d7   :  { %v719_v11 = vmul.f32 %v717_v10, %v701_v63 }
0x11d9   :  { %722 = vrot.lane.b32.xlu0 %v719_v11, %s1254_s3 }
0x11e1   :  { %518 = vrot.lane.b32.xlu0 %v516_v15, %s1254_s3 }
0x124b   :  { %v723_v16 = vpop.permute.xlu0 %722 }
0x124c   :  { %1031 = vmatmul.msk.f32.vlgmr.msrb.gmra.mxu3 %vm123_vm2, %v723_v16 }
0x1253   :  { %v519_v20 = vpop.permute.xlu0 %518 }
0x1254   :  { %v521_v22 = vadd.f32 %v519_v20, %v511_v21 }
0x12cf   :  { %v743_v18 = vpop.f32.mrf.mxu3 }
0x12d0   :  { %v746_v19 = vadd.f32 %v743_v18, %v720_v17 }
0x12d2   :  { %1113 = vtanh.f32 %v746_v19  ;;  %v747_v25 = vmul.f32 0.5, %v746_v19 }
0x12d3   :  { %1115 = vtanh.f32 %v521_v22 }
0x12d4   :  { %1117 = vtanh.f32 %v747_v25 }
0x12d8   :  { %v1114_v23 = vpop.eup %1113 }
0x12d9   :  { %754 = vrot.lane.b32.xlu2 %v1114_v23, %s1253_s13  ;;  %v1116_v24 = vpop.eup %1115 }
0x12da   :  { %v1118_v26 = vpop.eup %1117 }
0x12db   :  { %v749_v27 = vmul.f32 0.5, %v1118_v26 }
0x12dd   :  { %v750_v29 = vadd.f32 0.5, %v749_v27 }
0x12df   :  { %v752_v33 = vmul.f32 %v750_v29, %v713_v4 }
0x12e1   :  { %524 = vrot.lane.b32.xlu2 %v1116_v24, %s1253_s13 }
0x1333   :  { %v755_v8 = vpop.permute.xlu2 %754 }
0x1334   :  { %v757_v30 = vmul.f32 %v755_v8, %v750_v29 }
0x1336   :  { %759 = vrot.lane.b32.xlu1 %v757_v30, %s1254_s3 }
0x133b   :  { %v525_v31 = vpop.permute.xlu2 %524 }
0x133c   :  { %v527_v32 = vmul.f32 %v525_v31, %v509_v14 }
0x133e   :  { %529 = vrot.lane.b32.xlu1 %v527_v32, %s1254_s3 }
0x13a8   :  { %v760_v34 = vpop.permute.xlu1 %759 }
0x13a9   :  { %v762_v35 = vadd.f32 %v760_v34, %v752_v33 }
0x13ab   :  { %1119 = vtanh.f32 %v762_v35 }
0x13b0   :  { %v530_v36 = vpop.permute.xlu1 %529 }
0x13b1   :  { %v1120_v37 = vpop.eup %1119  ;;  %532 = vst.msk [vmem:[#allocation3 + $0xe] sm:$0x3] %vm174_vm1, %v530_v36 }
0x13b2   :  { %765 = vrot.lane.b32.xlu0 %v1120_v37, %s1253_s13 }
0x13b8   :  { %v543_v38 = vld [vmem:[#allocation3 + $0x8] sm:$0xff] }
0x13b9   :  { %1028 = vmatmul.msk.f32.gmra.mxu2 %vm123_vm2, %v543_v38 }
0x1424   :  { %v766_v39 = vpop.permute.xlu0 %765 }
0x1425   :  { %v768_v40 = vmul.f32 %v766_v39, %v750_v29 }
0x1427   :  { %771 = vrot.lane.b32.xlu2 %v768_v40, %s1254_s3 }
0x143c   :  { %v573_v41 = vpop.f32.mrf.mxu2 }
0x143d   :  { %v574_v42 = vadd.f32 %v1383_v28, %v573_v41 }
0x143f   :  { %577 = vst [vmem:[#allocation2 + $0x8] sm:$0xff] %v574_v42 }
0x1446   :  { %v769_v48 = vld [vmem:[#allocation2 + $0x8] sm:$0x3]  ;;  %v818_v62 = vld [vmem:[#allocation2 + $0xa] sm:$0x3]  ;;  %v867_v14 = vld [vmem:[#allocation2 + $0xc] sm:$0x3] }
0x1447   :  { %v916_v31 = vld [vmem:[#allocation2 + $0xe] sm:$0x3] }
0x1481   :  { %v772_v47 = vpop.permute.xlu2 %771 }
0x1482   :  { %1032 = vmatmul.msk.f32.vlgmr.msrb.gmra.mxu0 %vm123_vm2, %v772_v47 }
0x14ff   :  { %v792_v49 = vpop.f32.mrf.mxu0 }
0x1500   :  { %v795_v50 = vadd.f32 %v792_v49, %v769_v48  ;;  %v968_v49 = vld [vmem:[%s1522_s7 + $0x18] sm:$0xff] }
0x1501   :  { %990 = vmatpush.msra.mxu0 %v968_v49 }
0x1502   :  { %1121 = vtanh.f32 %v795_v50  ;;  %v796_v52 = vmul.f32 0.5, %v795_v50  ;;  %v967_v50 = vld [vmem:[%s1522_s7 + $0x10] sm:$0xff] }
0x1503   :  { %991 = vmatpush.msra.mxu0 %v967_v50 }
0x1504   :  { %1123 = vtanh.f32 %v796_v52  ;;  %v965_v52 = vld [vmem:[%s1522_s7] sm:$0xff] }
0x1508   :  { %v1122_v51 = vpop.eup %1121 }
0x1509   :  { %803 = vrot.lane.b32.xlu0 %v1122_v51, %s1253_s13  ;;  %v966_v51 = vld [vmem:[%s1522_s7 + $0x8] sm:$0xff] }
0x150a   :  { %v1124_v53 = vpop.eup %1123  ;;  %992 = vmatpush.msra.mxu0 %v966_v51 }
0x150b   :  { %v798_v54 = vmul.f32 0.5, %v1124_v53 }
0x150c   :  { %993 = vmatpush.msra.mxu0 %v965_v52 }
0x150d   :  { %v799_v7 = vadd.f32 0.5, %v798_v54 }
0x150f   :  { %v801_v28 = vmul.f32 %v799_v7, %v762_v35 }
0x157b   :  { %v804_v55 = vpop.permute.xlu0 %803 }
0x157c   :  { %v806_v56 = vmul.f32 %v804_v55, %v799_v7  ;;  %v1048_v55 = vld [vmem:[#allocation9] ss:$0 sm:$0xff] }
0x157e   :  { %808 = vrot.lane.b32.xlu1 %v806_v56, %s1254_s3 }
0x15f0   :  { %v809_v57 = vpop.permute.xlu1 %808 }
0x15f1   :  { %v811_v58 = vadd.f32 %v809_v57, %v801_v28 }
0x15f3   :  { %1125 = vtanh.f32 %v811_v58 }
0x15f9   :  { %v1126_v59 = vpop.eup %1125 }
0x15fa   :  { %814 = vrot.lane.b32.xlu2 %v1126_v59, %s1253_s13 }
0x1654   :  { %v815_v60 = vpop.permute.xlu2 %814 }
0x1655   :  { %v817_v61 = vmul.f32 %v815_v60, %v799_v7 }
0x1657   :  { %820 = vrot.lane.b32.xlu0 %v817_v61, %s1254_s3 }
0x16c9   :  { %v821_v43 = vpop.permute.xlu0 %820 }
0x16ca   :  { %1033 = vmatmul.msk.f32.vlgmr.msra.gmra.mxu1 %vm123_vm2, %v821_v43 }
0x1747   :  { %v841_v44 = vpop.f32.mrf.mxu1 }
0x1748   :  { %v844_v63 = vadd.f32 %v841_v44, %v818_v62 }
0x174a   :  { %1127 = vtanh.f32 %v844_v63  ;;  %v845_v0 = vmul.f32 0.5, %v844_v63 }
0x174c   :  { %1129 = vtanh.f32 %v845_v0 }
0x1750   :  { %v1128_v45 = vpop.eup %1127 }
0x1751   :  { %852 = vrot.lane.b32.xlu1 %v1128_v45, %s1253_s13 }
0x1752   :  { %v1130_v1 = vpop.eup %1129 }
0x1753   :  { %v847_v46 = vmul.f32 0.5, %v1130_v1 }
0x1755   :  { %v848_v2 = vadd.f32 0.5, %v847_v46 }
0x1757   :  { %v850_v5 = vmul.f32 %v848_v2, %v811_v58 }
0x17c3   :  { %v853_v3 = vpop.permute.xlu1 %852 }
0x17c4   :  { %v855_v4 = vmul.f32 %v853_v3, %v848_v2 }
0x17c6   :  { %857 = vrot.lane.b32.xlu2 %v855_v4, %s1254_s3 }
0x1820   :  { %v858_v6 = vpop.permute.xlu2 %857 }
0x1821   :  { %v860_v9 = vadd.f32 %v858_v6, %v850_v5 }
0x1823   :  { %1131 = vtanh.f32 %v860_v9 }
0x1829   :  { %v1132_v10 = vpop.eup %1131 }
0x182a   :  { %863 = vrot.lane.b32.xlu0 %v1132_v10, %s1253_s13 }
0x189c   :  { %v864_v11 = vpop.permute.xlu0 %863 }
0x189d   :  { %v866_v12 = vmul.f32 %v864_v11, %v848_v2 }
0x189f   :  { %869 = vrot.lane.b32.xlu1 %v866_v12, %s1254_s3 }
0x1911   :  { %v870_v13 = vpop.permute.xlu1 %869 }
0x1912   :  { %1034 = vmatmul.msk.f32.vlgmr.msrb.gmra.mxu2 %vm123_vm2, %v870_v13 }
0x1995   :  { %v890_v15 = vpop.f32.mrf.mxu2 }
0x1996   :  { %v893_v16 = vadd.f32 %v890_v15, %v867_v14 }
0x1998   :  { %1133 = vtanh.f32 %v893_v16  ;;  %v894_v18 = vmul.f32 0.5, %v893_v16 }
0x199a   :  { %1135 = vtanh.f32 %v894_v18 }
0x199e   :  { %v1134_v17 = vpop.eup %1133 }
0x199f   :  { %901 = vrot.lane.b32.xlu2 %v1134_v17, %s1253_s13 }
0x19a0   :  { %v1136_v19 = vpop.eup %1135 }
0x19a1   :  { %v896_v20 = vmul.f32 0.5, %v1136_v19 }
0x19a3   :  { %v897_v21 = vadd.f32 0.5, %v896_v20 }
0x19a5   :  { %v899_v24 = vmul.f32 %v897_v21, %v860_v9 }
0x19f9   :  { %v902_v22 = vpop.permute.xlu2 %901 }
0x19fa   :  { %v904_v23 = vmul.f32 %v902_v22, %v897_v21 }
0x19fc   :  { %906 = vrot.lane.b32.xlu0 %v904_v23, %s1254_s3 }
0x1a6e   :  { %v907_v25 = vpop.permute.xlu0 %906 }
0x1a6f   :  { %v909_v26 = vadd.f32 %v907_v25, %v899_v24 }
0x1a71   :  { %1137 = vtanh.f32 %v909_v26 }
0x1a77   :  { %v1138_v27 = vpop.eup %1137 }
0x1a78   :  { %912 = vrot.lane.b32.xlu1 %v1138_v27, %s1253_s13 }
0x1aea   :  { %v913_v29 = vpop.permute.xlu1 %912 }
0x1aeb   :  { %v915_v8 = vmul.f32 %v913_v29, %v897_v21 }
0x1aed   :  { %918 = vrot.lane.b32.xlu2 %v915_v8, %s1254_s3 }
0x1b47   :  { %v919_v30 = vpop.permute.xlu2 %918 }
0x1b48   :  { %1035 = vmatmul.msk.f32.vlgmr.msra.gmra.mxu3 %vm123_vm2, %v919_v30 }
0x1bcb   :  { %v939_v32 = vpop.f32.mrf.mxu3 }
0x1bcc   :  { %v942_v33 = vadd.f32 %v939_v32, %v916_v31 }
0x1bce   :  { %1139 = vtanh.f32 %v942_v33  ;;  %v943_v35 = vmul.f32 0.5, %v942_v33 }
0x1bd0   :  { %1141 = vtanh.f32 %v943_v35 }
0x1bd4   :  { %v1140_v34 = vpop.eup %1139 }
0x1bd5   :  { %950 = vrot.lane.b32.xlu0 %v1140_v34, %s1253_s13 }
0x1bd6   :  { %v1142_v36 = vpop.eup %1141 }
0x1bd7   :  { %v945_v37 = vmul.f32 0.5, %v1142_v36 }
0x1bd9   :  { %v946_v38 = vadd.f32 0.5, %v945_v37 }
0x1bdb   :  { %v948_v41 = vmul.f32 %v946_v38, %v909_v26 }
0x1c47   :  { %v951_v39 = vpop.permute.xlu0 %950 }
0x1c48   :  { %v953_v40 = vmul.f32 %v951_v39, %v946_v38 }
0x1c4a   :  { %955 = vrot.lane.b32.xlu1 %v953_v40, %s1254_s3 }
0x1cbc   :  { %v956_v42 = vpop.permute.xlu1 %955 }
0x1cbd   :  { %v958_v47 = vadd.f32 %v956_v42, %v948_v41 }
0x1cbf   :  { %1143 = vtanh.f32 %v958_v47 }
0x1cc5   :  { %v1144_v48 = vpop.eup %1143 }
0x1cc6   :  { %961 = vrot.lane.b32.xlu2 %v1144_v48, %s1253_s13 }
0x1d20   :  { %v962_v53 = vpop.permute.xlu2 %961 }
0x1d21   :  { %v964_v54 = vmul.f32 %v962_v53, %v946_v38 }
0x1d23   :  { %974 = vrot.lane.b32.xlu0 %v964_v54, %s1254_s3 }
0x1d95   :  { %v975_v7 = vpop.permute.xlu0 %974 }
0x1d96   :  { %1036 = vmatmul.msk.f32.vlgmr.msra.gmra.mxu0 %vm123_vm2, %v975_v7 }
0x1e13   :  { %v995_v56 = vpop.f32.mrf.mxu0 }
0x1e14   :  { %v996_v28 = vadd.f32 %v1048_v55, %v995_v56 }
0x1e16   :  { %999 = vst.msk [vmem:[#allocation10] sm:$0x3] %vm998_vm3, %v996_v28 }
0x1e17   :  { %1010 = dma.vmem_to_hbm [thread:$0]  %s1006_s29, 32, %s1008_s11, [#allocation6]  }
0x1e18   :  { %1245 = dma.done.wait [#allocation6], 32  }
0x1e19   :  { %1246 = vsyncadd [#allocation6], 4294967264 }
0x1e1a   :  { %1015 = vsyncpa [#allocation5], 1 }
0x1e1b   :  { %1016 = vsyncpa [#allocation8], 1 }
0x1e1c   :  { %1017 = vsyncpa [#allocation6], 1 }

</bundles_post_ra>
